<compile_context>
chip_gen: v5e
topology: v5e:2x2
jax: 0.10.0
libtpu: 0.0.40
codegen_flags: <defaults>
</compile_context>

<pallas_src>
import functools

import jax
import jax.numpy as jnp
import numpy as np
from jax.experimental import pallas as pl
from jax.experimental.pallas import tpu as pltpu


def _round_up(n, m):
    return ((n + m - 1) // m) * m


def _vmem_limit(estimate_bytes):
    """VMEM budget from the actual footprint estimate + device capacity."""
    try:
        cap = int(pltpu.get_tpu_info().vmem_capacity_bytes)
    except Exception:
        cap = 64 * 1024 * 1024          # conservative (v7x per-core) fallback
    want = int(estimate_bytes * 1.5) + (4 << 20)
    return int(max(16 << 20, min(want, int(cap * 0.85))))


# ----------------------------- Pallas kernels ------------------------------ #

def wavenet_stack_kernel(
        x_ref,       # (TR, CP)      f32  input rows (whole sequences)
        w_in_ref,    # (2, CP, HP)   bf16 input-conv taps [shifted, current]
        b_in_ref,    # (1, HP)       f32
        w_blk_ref,   # (1, 2*HP, HP) bf16 streamed packed dilated-conv taps
        b_blk_ref,   # (1, 1, HP)    f32  streamed
        w_res_ref,   # (1, HP, HP)   bf16 streamed 1x1 residual conv
        b_res_ref,   # (1, 1, HP)    f32  streamed
        w_f1_ref,    # (HP, HP)      bf16
        b_f1_ref,    # (1, HP)       f32
        w_f2_ref,    # (HP, CP)      bf16
        b_f2_ref,    # (1, CP)       f32
        out_ref,     # (TR, CP)      f32  pre-softmax logits
        h_ref,       # (TR, HP)      f32  residual stream (persists over k)
        skip_ref,    # (TR, HP)      f32  skip accumulator (persists over k)
        op_ref,      # (TR, 2*HP)    bf16 fused conv operand [shifted | current]
        *, seq_len, dilations):
    """One (row-tile, block) grid step of the WaveNet stack.

    Grid = (row_tiles ["parallel"], n_blocks ["arbitrary"]).  Rows = batch*time
    flattened; each row tile holds WHOLE sequences, so the causal roll + t<d
    mask never mixes different sequences.
    """
    k = pl.program_id(1)
    n_blocks = len(dilations)
    tr = x_ref.shape[0]
    hp = h_ref.shape[1]
    bf16 = jnp.bfloat16

    # Time index of every row in this tile (tiles hold whole sequences).
    t_idx = jax.lax.broadcasted_iota(jnp.int32, (tr, 1), 0) % seq_len

    def causal_shift(v, d):
        # v[t] -> v[t-d] within the same sequence, 0 for t < d.  Static-shift
        # roll (XLU slot) + VPU mask; rolled-in wrap rows always have t < d.
        return jnp.where(t_idx < d, 0.0, pltpu.roll(v, shift=d, axis=0))

    # ---- k == 0: input conv, init residual stream + skip accumulator --------
    @pl.when(k == 0)
    def _init():
        x = x_ref[...]
        xs = causal_shift(x, 1)
        h0 = (jnp.dot(xs.astype(bf16), w_in_ref[0],
                      preferred_element_type=jnp.float32)
              + jnp.dot(x.astype(bf16), w_in_ref[1],
                        preferred_element_type=jnp.float32)
              + b_in_ref[...])
        h_ref[...] = h0
        skip_ref[...] = jnp.zeros_like(skip_ref)

    # ---- residual block k (this block's weights streamed in by index_map) ---
    h = h_ref[...]
    op_ref[:, hp:] = h.astype(bf16)                       # current tap
    # Dilation = 2**k: statically unrolled switch -> exactly one static roll
    # executes at runtime (avoids dynamic-shift roll lowering).
    for i, d in enumerate(dilations):
        @pl.when(k == i)
        def _shift(d=d):
            op_ref[:, :hp] = causal_shift(h, d).astype(bf16)

    # Fused K = 2*HP contraction over both conv taps (fills v6e/v7x MXU depth).
    pre = (jnp.dot(op_ref[...], w_blk_ref[0], preferred_element_type=jnp.float32)
           + b_blk_ref[0])
    gated = jnp.tanh(pre) * jax.nn.sigmoid(pre)           # GatedUnit (f32)
    res = (jnp.dot(gated.astype(bf16), w_res_ref[0],
                   preferred_element_type=jnp.float32) + b_res_ref[0])
    skip_ref[...] = skip_ref[...] + res                   # skips accumulation
    h_ref[...] = h + res                                  # residual (x += out)

    # ---- k == last: relu -> 1x1 -> relu -> 1x1 head, store logits -----------
    @pl.when(k == n_blocks - 1)
    def _head():
        y = jnp.maximum(skip_ref[...], 0.0)
        y = (jnp.dot(y.astype(bf16), w_f1_ref[...],
                     preferred_element_type=jnp.float32) + b_f1_ref[...])
        y = jnp.maximum(y, 0.0)
        y = (jnp.dot(y.astype(bf16), w_f2_ref[...],
                     preferred_element_type=jnp.float32) + b_f2_ref[...])
        out_ref[...] = y.astype(out_ref.dtype)            # lane-dense store


def softmax_axis0_kernel(z_ref, out_ref):
    """F.softmax with PyTorch's legacy implicit dim=0 (batch) on (N, TL, CP)."""
    z = z_ref[...]
    m = jnp.max(z, axis=0, keepdims=True)
    e = jnp.exp(z - m)
    denom = jnp.sum(e, axis=0, keepdims=True)
    out_ref[...] = (e * pl.reciprocal(denom, approx=False)).astype(out_ref.dtype)


# ------------------------------- wrapper ----------------------------------- #

def wavenet_forward(x_ncl, params, *, row_tile_target=512):
    """x_ncl: (N, num_classes, L) float32 (PyTorch NCL). Returns same layout."""
    (W_in, b_in, W_dil, b_dil, W_res, b_res, W_f1, b_f1, W_f2, b_f2) = params
    N, NC, L = x_ncl.shape
    H = W_in.shape[2]
    NB = W_dil.shape[0]

    CP = _round_up(NC, 128)          # lane-padded num_classes
    HP = _round_up(H, 128)           # lane-padded hidden
    NL = N * L

    # Row tiling by WHOLE sequences (required for the causal roll+mask).
    spt = max(1, min(N, row_tile_target // max(L, 1)))
    while N % spt != 0:
        spt -= 1
    TR = spt * L
    RT = N // spt
    if RT > 1 and TR % 8 != 0:       # (8,128) sublane rule for non-full blocks
        spt, TR, RT = N, NL, 1

    f32, bf16 = jnp.float32, jnp.bfloat16

    # NCL -> NLC -> flatten batch+time into the matmul M axis, pad channels.
    # TODO(synk): accept (N, L, NC) input directly to skip this extra HBM pass.
    x = jnp.transpose(x_ncl, (0, 2, 1)).astype(f32).reshape(NL, NC)
    x = jnp.pad(x, ((0, 0), (0, CP - NC)))

    # Weights: zero-pad to lane widths, pack conv taps along K, cast to bf16.
    # Zero padding is preserved through conv / tanh*sigmoid / relu, so padded
    # lanes never contaminate real ones; they are sliced off at the end.
    w_in = jnp.pad(W_in, ((0, 0), (0, CP - NC), (0, HP - H))).astype(bf16)
    b_in_p = jnp.pad(b_in, ((0, 0), (0, HP - H))).astype(f32)
    w_blk = (jnp.pad(W_dil, ((0, 0), (0, 0), (0, HP - H), (0, HP - H)))
             .reshape(NB, 2 * HP, HP).astype(bf16))       # [tap0; tap1] along K
    b_blk = jnp.pad(b_dil, ((0, 0), (0, 0), (0, HP - H))).astype(f32)
    w_res = jnp.pad(W_res, ((0, 0), (0, HP - H), (0, HP - H))).astype(bf16)
    b_res_p = jnp.pad(b_res, ((0, 0), (0, 0), (0, HP - H))).astype(f32)
    w_f1 = jnp.pad(W_f1, ((0, HP - H), (0, HP - H))).astype(bf16)
    b_f1_p = jnp.pad(b_f1, ((0, 0), (0, HP - H))).astype(f32)
    w_f2 = jnp.pad(W_f2, ((0, HP - H), (0, CP - NC))).astype(bf16)
    b_f2_p = jnp.pad(b_f2, ((0, 0), (0, CP - NC))).astype(f32)

    dilations = tuple(2 ** i for i in range(NB))
    kernel = functools.partial(wavenet_stack_kernel, seq_len=L,
                               dilations=dilations)

    def const_spec(shape):
        zeros = (0,) * len(shape)
        return pl.BlockSpec(shape, lambda r, k: zeros)    # resident (not re-DMA'd)

    in_specs = [
        pl.BlockSpec((TR, CP), lambda r, k: (r, 0)),          # x row tile
        const_spec((2, CP, HP)), const_spec((1, HP)),         # input conv
        pl.BlockSpec((1, 2 * HP, HP), lambda r, k: (k, 0, 0)),  # W_dil[k] streamed
        pl.BlockSpec((1, 1, HP), lambda r, k: (k, 0, 0)),       # b_dil[k]
        pl.BlockSpec((1, HP, HP), lambda r, k: (k, 0, 0)),      # W_res[k] streamed
        pl.BlockSpec((1, 1, HP), lambda r, k: (k, 0, 0)),       # b_res[k]
        const_spec((HP, HP)), const_spec((1, HP)),              # head (resident)
        const_spec((HP, CP)), const_spec((1, CP)),
    ]
    out_spec = pl.BlockSpec((TR, CP), lambda r, k: (r, 0))
    scratch = [pltpu.VMEM((TR, HP), f32),           # h (residual stream)
               pltpu.VMEM((TR, HP), f32),           # skip accumulator
               pltpu.VMEM((TR, 2 * HP), bf16)]      # fused conv operand

    blk_w_bytes = (2 * HP * HP) * 2 + HP * 4 + (HP * HP) * 2 + HP * 4
    res_w_bytes = ((2 * CP * HP) * 2 + HP * 4 + (HP * HP) * 2 + HP * 4
                   + (HP * CP) * 2 + CP * 4)
    est = (2 * TR * CP * 4            # x tile, double-buffered
           + 2 * TR * CP * 4          # logits tile, double-buffered
           + 2 * blk_w_bytes          # streamed block weights, double-buffered
           + 2 * res_w_bytes          # resident weights (conservative)
           + 2 * TR * HP * 4          # h + skip scratch
           + TR * 2 * HP * 2)         # bf16 fused-operand scratch

    logits = pl.pallas_call(
        kernel,
        out_shape=jax.ShapeDtypeStruct((NL, CP), f32),
        grid_spec=pltpu.PrefetchScalarGridSpec(
            num_scalar_prefetch=0,
            grid=(RT, NB),
            in_specs=in_specs,
            out_specs=out_spec,
            scratch_shapes=scratch),
        compiler_params=pltpu.CompilerParams(
            dimension_semantics=("parallel", "arbitrary"),
            vmem_limit_bytes=_vmem_limit(est)),
    )(x, w_in, b_in_p, w_blk, b_blk, w_res, b_res_p,
      w_f1, b_f1_p, w_f2, b_f2_p)

    # Softmax over the (implicit dim=0) batch axis — intentional PyTorch legacy
    # behaviour for 3-D input.  Tiled over time with "parallel" semantics; the
    # batch axis stays whole per block because it is the reduction axis.
    z = logits.reshape(N, L, CP)
    TL = next((c for c in (128, 64, 32, 16, 8) if L % c == 0 and c < L), L)
    probs = pl.pallas_call(
        softmax_axis0_kernel,
        out_shape=jax.ShapeDtypeStruct((N, L, CP), f32),
        grid_spec=pltpu.PrefetchScalarGridSpec(
            num_scalar_prefetch=0,
            grid=(L // TL,),
            in_specs=[pl.BlockSpec((N, TL, CP), lambda j: (0, j, 0))],
            out_specs=pl.BlockSpec((N, TL, CP), lambda j: (0, j, 0))),
        compiler_params=pltpu.CompilerParams(
            dimension_semantics=("parallel",),
            vmem_limit_bytes=_vmem_limit(4 * N * TL * CP * 4)),
    )(z)

    # Drop channel padding, return to the PyTorch NCL layout.
    return jnp.transpose(probs[:, :, :NC], (0, 2, 1))


# ------------------------- params & pure-JAX reference ---------------------- #

def init_params(key, num_classes, hidden, n_blocks):
    ks = list(jax.random.split(key, 10))

    def uni(k, shape, fan_in):
        bound = 1.0 / np.sqrt(fan_in)
        return jax.random.uniform(k, shape, jnp.float32, -bound, bound)

    W_in = uni(ks[0], (2, num_classes, hidden), num_classes * 2)
    b_in = uni(ks[1], (1, hidden), num_classes * 2)
    W_dil = uni(ks[2], (n_blocks, 2, hidden, hidden), hidden * 2)
    b_dil = uni(ks[3], (n_blocks, 1, hidden), hidden * 2)
    W_res = uni(ks[4], (n_blocks, hidden, hidden), hidden)
    b_res = uni(ks[5], (n_blocks, 1, hidden), hidden)
    W_f1 = uni(ks[6], (hidden, hidden), hidden)
    b_f1 = uni(ks[7], (1, hidden), hidden)
    W_f2 = uni(ks[8], (hidden, num_classes), hidden)
    b_f2 = uni(ks[9], (1, num_classes), hidden)
    return (W_in, b_in, W_dil, b_dil, W_res, b_res, W_f1, b_f1, W_f2, b_f2)


def wavenet_reference(x_ncl, params, *, bf16_dots=False):
    """Pure-JAX reference.  bf16_dots=True mirrors the kernel's operand precision."""
    (W_in, b_in, W_dil, b_dil, W_res, b_res, W_f1, b_f1, W_f2, b_f2) = params
    x = jnp.transpose(x_ncl, (0, 2, 1)).astype(jnp.float32)       # (N, L, NC)
    n_blocks = W_dil.shape[0]
    L = x.shape[1]
    hi = jax.lax.Precision.HIGHEST

    def mm(a, w):
        if bf16_dots:
            return jnp.einsum('nlc,cd->nld', a.astype(jnp.bfloat16),
                              w.astype(jnp.bfloat16),
                              preferred_element_type=jnp.float32)
        return jnp.einsum('nlc,cd->nld', a, w, precision=hi)

    def causal(h, d, w0, w1, b):
        shifted = jnp.pad(h, ((0, 0), (d, 0), (0, 0)))[:, :L, :]
        return mm(shifted, w0) + mm(h, w1) + b

    h = causal(x, 1, W_in[0], W_in[1], b_in)
    skips = []
    for k in range(n_blocks):
        out = causal(h, 2 ** k, W_dil[k, 0], W_dil[k, 1], b_dil[k])
        out = jnp.tanh(out) * jax.nn.sigmoid(out)
        out = mm(out, W_res[k]) + b_res[k]
        skips.append(out)
        h = h + out
    y = functools.reduce(lambda a, b: a + b, skips)
    y = jnp.maximum(y, 0.0)
    y = mm(y, W_f1) + b_f1
    y = jnp.maximum(y, 0.0)
    y = mm(y, W_f2) + b_f2
    p = jax.nn.softmax(y, axis=0)        # PyTorch legacy implicit dim=0 for 3-D
    return jnp.transpose(p, (0, 2, 1))


# TODO(synk): WaveNet.generate() (host-side autoregressive numpy sampling loop
# + mu_law_decoding) is not part of forward() and is not implemented as a kernel.

if __name__ == "__main__":
    NUM_CLASSES, HIDDEN, N_BLOCKS = 16, 32, 4
    N, L = 4, 64

    key = jax.random.PRNGKey(0)
    kx, kp = jax.random.split(key)
    x_ncl = jax.random.normal(kx, (N, NUM_CLASSES, L), jnp.float32)
    params = init_params(kp, NUM_CLASSES, HIDDEN, N_BLOCKS)

    # Small row_tile_target so the test exercises the "parallel" row-tile axis
    # (RT > 1) as well as the streamed-weight "arbitrary" block axis.
    out = jax.block_until_ready(wavenet_forward(x_ncl, params, row_tile_target=64))
    assert out.shape == (N, NUM_CLASSES, L)

    # Check vs. a reference with matching bf16 dot operands (f32 accumulation).
    ref_bf16 = jax.block_until_ready(wavenet_reference(x_ncl, params, bf16_dots=True))
    np.testing.assert_allclose(np.asarray(out), np.asarray(ref_bf16),
                               rtol=2e-2, atol=1e-2)

    # Looser check vs. the full-f32 reference (bounds bf16 operand error).
    ref_f32 = jax.block_until_ready(wavenet_reference(x_ncl, params, bf16_dots=False))
    np.testing.assert_allclose(np.asarray(out), np.asarray(ref_f32),
                               rtol=5e-2, atol=4e-2)

    # Softmax over the batch axis (PyTorch implicit dim=0) must sum to 1.
    np.testing.assert_allclose(np.asarray(out).sum(axis=0), 1.0, atol=1e-5)

    print("KERNEL_OK")
</pallas_src>

<mosaic_0001>
module attributes {stable_mosaic.version = 11 : i64} {
  func.func @wavenet_stack_kernel(%arg0: i32, %arg1: i32, %arg2: memref<64x128xf32, #tpu.memory_space<vmem>>, %arg3: memref<2x128x128xbf16, #tpu.memory_space<vmem>>, %arg4: memref<1x128xf32, #tpu.memory_space<vmem>>, %arg5: memref<1x256x128xbf16, #tpu.memory_space<vmem>>, %arg6: memref<1x1x128xf32, #tpu.memory_space<vmem>>, %arg7: memref<1x128x128xbf16, #tpu.memory_space<vmem>>, %arg8: memref<1x1x128xf32, #tpu.memory_space<vmem>>, %arg9: memref<128x128xbf16, #tpu.memory_space<vmem>>, %arg10: memref<1x128xf32, #tpu.memory_space<vmem>>, %arg11: memref<128x128xbf16, #tpu.memory_space<vmem>>, %arg12: memref<1x128xf32, #tpu.memory_space<vmem>>, %arg13: memref<64x128xf32, #tpu.memory_space<vmem>>, %arg14: memref<64x128xf32, #tpu.memory_space<vmem>>, %arg15: memref<64x128xf32, #tpu.memory_space<vmem>>, %arg16: memref<64x256xbf16, #tpu.memory_space<vmem>>) attributes {dimension_semantics = [#tpu.dimension_semantics<parallel>, #tpu.dimension_semantics<arbitrary>], iteration_bounds = array<i64: 4, 4>, scalar_prefetch = 0 : i64, scratch_operands = 3 : i64, tpu.core_type = #tpu.core_type<tc>, window_params = [{transform_indices = @transform_0, window_bounds = array<i64: 64, 128>}, {pipeline_mode = #tpu.pipeline_mode<synchronous>, transform_indices = @transform_1, window_bounds = array<i64: 2, 128, 128>}, {pipeline_mode = #tpu.pipeline_mode<synchronous>, transform_indices = @transform_2, window_bounds = array<i64: 1, 128>}, {transform_indices = @transform_3, window_bounds = array<i64: 1, 256, 128>}, {transform_indices = @transform_4, window_bounds = array<i64: 1, 1, 128>}, {transform_indices = @transform_5, window_bounds = array<i64: 1, 128, 128>}, {transform_indices = @transform_6, window_bounds = array<i64: 1, 1, 128>}, {pipeline_mode = #tpu.pipeline_mode<synchronous>, transform_indices = @transform_7, window_bounds = array<i64: 128, 128>}, {pipeline_mode = #tpu.pipeline_mode<synchronous>, transform_indices = @transform_8, window_bounds = array<i64: 1, 128>}, {pipeline_mode = #tpu.pipeline_mode<synchronous>, transform_indices = @transform_9, window_bounds = array<i64: 128, 128>}, {pipeline_mode = #tpu.pipeline_mode<synchronous>, transform_indices = @transform_10, window_bounds = array<i64: 1, 128>}, {transform_indices = @transform_11, window_bounds = array<i64: 64, 128>}]} {
    %0 = tpu.iota {dimensions = array<i32: 0>} : vector<64x1xi32>
    %c64_i32 = arith.constant 64 : i32
    %c0_i32 = arith.constant 0 : i32
    %1 = arith.cmpi eq, %c64_i32, %c0_i32 : i32
    %c1_i32 = arith.constant 1 : i32
    %2 = arith.select %1, %c1_i32, %c64_i32 : i32
    %3 = vector.broadcast %2 : i32 to vector<64x1xi32>
    %4 = arith.remsi %0, %3 : vector<64x1xi32>
    %c0_i32_0 = arith.constant 0 : i32
    %5 = vector.broadcast %c0_i32_0 : i32 to vector<64x1xi32>
    %6 = arith.cmpi ne, %4, %5 : vector<64x1xi32>
    %c0_i32_1 = arith.constant 0 : i32
    %7 = vector.broadcast %c0_i32_1 : i32 to vector<64x1xi32>
    %8 = arith.cmpi slt, %4, %7 : vector<64x1xi32>
    %c0_i32_2 = arith.constant 0 : i32
    %9 = arith.cmpi slt, %2, %c0_i32_2 : i32
    %10 = vector.broadcast %9 : i1 to vector<64x1xi1>
    %11 = vector.broadcast %10 : vector<64x1xi1> to vector<64x1xi1>
    %12 = arith.xori %8, %11 : vector<64x1xi1>
    %13 = arith.andi %12, %6 : vector<64x1xi1>
    %14 = vector.broadcast %2 : i32 to vector<64x1xi32>
    %15 = arith.addi %4, %14 : vector<64x1xi32>
    %16 = arith.select %13, %15, %4 : vector<64x1xi1>, vector<64x1xi32>
    %c0_i32_3 = arith.constant 0 : i32
    %17 = arith.cmpi eq, %arg1, %c0_i32_3 : i32
    %18 = arith.extui %17 : i1 to i32
    %c0_i32_4 = arith.constant 0 : i32
    %19 = arith.cmpi ne, %18, %c0_i32_4 : i32
    scf.if %19 {
      %c0_37 = arith.constant 0 : index
      %c0_38 = arith.constant 0 : index
      %66 = vector.load %arg2[%c0_37, %c0_38] : memref<64x128xf32, #tpu.memory_space<vmem>>, vector<64x128xf32>
      %c1_i32_39 = arith.constant 1 : i32
      %67 = vector.broadcast %c1_i32_39 : i32 to vector<64x1xi32>
      %68 = arith.cmpi slt, %16, %67 : vector<64x1xi32>
      %c1_i32_40 = arith.constant 1 : i32
      %69 = tpu.dynamic_rotate %66 by %c1_i32_40 dim 0 : vector<64x128xf32>, i32 -> vector<64x128xf32>
      %cst_41 = arith.constant 0.000000e+00 : f32
      %70 = vector.shape_cast %68 : vector<64x1xi1> to vector<64x1xi1>
      %71 = vector.broadcast %70 : vector<64x1xi1> to vector<64x128xi1>
      %72 = vector.broadcast %cst_41 : f32 to vector<64x128xf32>
      %73 = arith.select %71, %72, %69 : vector<64x128xi1>, vector<64x128xf32>
      %74 = arith.truncf %73 : vector<64x128xf32> to vector<64x128xbf16>
      %c0_42 = arith.constant 0 : index
      %c0_43 = arith.constant 0 : index
      %c0_44 = arith.constant 0 : index
      %75 = vector.load %arg3[%c0_42, %c0_43, %c0_44] : memref<2x128x128xbf16, #tpu.memory_space<vmem>>, vector<1x128x128xbf16>
      %76 = vector.shape_cast %75 : vector<1x128x128xbf16> to vector<128x128xbf16>
      %cst_45 = arith.constant dense<0.000000e+00> : vector<64x128xf32>
      %77 = tpu.matmul %74, %76, %cst_45 {dimension_numbers = #tpu.dot_dimension_numbers<[1], [0], [0], [1], [0, 0, 1, 1], [], []>} : vector<64x128xbf16>, vector<128x128xbf16>, vector<64x128xf32> -> vector<64x128xf32>
      %78 = arith.truncf %66 : vector<64x128xf32> to vector<64x128xbf16>
      %c1 = arith.constant 1 : index
      %c0_46 = arith.constant 0 : index
      %c0_47 = arith.constant 0 : index
      %79 = vector.load %arg3[%c1, %c0_46, %c0_47] : memref<2x128x128xbf16, #tpu.memory_space<vmem>>, vector<1x128x128xbf16>
      %80 = vector.shape_cast %79 : vector<1x128x128xbf16> to vector<128x128xbf16>
      %cst_48 = arith.constant dense<0.000000e+00> : vector<64x128xf32>
      %81 = tpu.matmul %78, %80, %cst_48 {dimension_numbers = #tpu.dot_dimension_numbers<[1], [0], [0], [1], [0, 0, 1, 1], [], []>} : vector<64x128xbf16>, vector<128x128xbf16>, vector<64x128xf32> -> vector<64x128xf32>
      %82 = arith.addf %77, %81 : vector<64x128xf32>
      %c0_49 = arith.constant 0 : index
      %c0_50 = arith.constant 0 : index
      %83 = vector.load %arg4[%c0_49, %c0_50] : memref<1x128xf32, #tpu.memory_space<vmem>>, vector<1x128xf32>
      %84 = vector.broadcast %83 : vector<1x128xf32> to vector<64x128xf32>
      %85 = arith.addf %82, %84 : vector<64x128xf32>
      %c0_51 = arith.constant 0 : index
      %c0_52 = arith.constant 0 : index
      %86 = vector.load %arg14[%c0_51, %c0_52] : memref<64x128xf32, #tpu.memory_space<vmem>>, vector<64x128xf32>
      tpu.vector_store %arg14[%c0_51, %c0_52], %85 {strides = array<i32>} : memref<64x128xf32, #tpu.memory_space<vmem>>, vector<64x128xf32>,
      %cst_53 = arith.constant 0.000000e+00 : f32
      %87 = vector.broadcast %cst_53 : f32 to vector<64x128xf32>
      %c0_54 = arith.constant 0 : index
      %c0_55 = arith.constant 0 : index
      %88 = vector.load %arg15[%c0_54, %c0_55] : memref<64x128xf32, #tpu.memory_space<vmem>>, vector<64x128xf32>
      tpu.vector_store %arg15[%c0_54, %c0_55], %87 {strides = array<i32>} : memref<64x128xf32, #tpu.memory_space<vmem>>, vector<64x128xf32>,
    } else {
    }
    %c0 = arith.constant 0 : index
    %c0_5 = arith.constant 0 : index
    %20 = vector.load %arg14[%c0, %c0_5] : memref<64x128xf32, #tpu.memory_space<vmem>>, vector<64x128xf32>
    %21 = arith.truncf %20 : vector<64x128xf32> to vector<64x128xbf16>
    %c0_6 = arith.constant 0 : index
    %c128 = arith.constant 128 : index
    %22 = vector.load %arg16[%c0_6, %c128] : memref<64x256xbf16, #tpu.memory_space<vmem>>, vector<64x128xbf16>
    tpu.vector_store %arg16[%c0_6, %c128], %21 {strides = array<i32>} : memref<64x256xbf16, #tpu.memory_space<vmem>>, vector<64x128xbf16>,
    %c0_i32_7 = arith.constant 0 : i32
    %23 = arith.cmpi eq, %arg1, %c0_i32_7 : i32
    %24 = arith.extui %23 : i1 to i32
    %c0_i32_8 = arith.constant 0 : i32
    %25 = arith.cmpi ne, %24, %c0_i32_8 : i32
    scf.if %25 {
      %c1_i32_37 = arith.constant 1 : i32
      %66 = vector.broadcast %c1_i32_37 : i32 to vector<64x1xi32>
      %67 = arith.cmpi slt, %16, %66 : vector<64x1xi32>
      %c1_i32_38 = arith.constant 1 : i32
      %68 = tpu.dynamic_rotate %20 by %c1_i32_38 dim 0 : vector<64x128xf32>, i32 -> vector<64x128xf32>
      %cst_39 = arith.constant 0.000000e+00 : f32
      %69 = vector.shape_cast %67 : vector<64x1xi1> to vector<64x1xi1>
      %70 = vector.broadcast %69 : vector<64x1xi1> to vector<64x128xi1>
      %71 = vector.broadcast %cst_39 : f32 to vector<64x128xf32>
      %72 = arith.select %70, %71, %68 : vector<64x128xi1>, vector<64x128xf32>
      %73 = arith.truncf %72 : vector<64x128xf32> to vector<64x128xbf16>
      %c0_40 = arith.constant 0 : index
      %c0_41 = arith.constant 0 : index
      %74 = vector.load %arg16[%c0_40, %c0_41] : memref<64x256xbf16, #tpu.memory_space<vmem>>, vector<64x128xbf16>
      tpu.vector_store %arg16[%c0_40, %c0_41], %73 {strides = array<i32>} : memref<64x256xbf16, #tpu.memory_space<vmem>>, vector<64x128xbf16>,
    } else {
    }
    %c1_i32_9 = arith.constant 1 : i32
    %26 = arith.cmpi eq, %arg1, %c1_i32_9 : i32
    %27 = arith.extui %26 : i1 to i32
    %c0_i32_10 = arith.constant 0 : i32
    %28 = arith.cmpi ne, %27, %c0_i32_10 : i32
    scf.if %28 {
      %c2_i32_37 = arith.constant 2 : i32
      %66 = vector.broadcast %c2_i32_37 : i32 to vector<64x1xi32>
      %67 = arith.cmpi slt, %16, %66 : vector<64x1xi32>
      %c2_i32_38 = arith.constant 2 : i32
      %68 = tpu.dynamic_rotate %20 by %c2_i32_38 dim 0 : vector<64x128xf32>, i32 -> vector<64x128xf32>
      %cst_39 = arith.constant 0.000000e+00 : f32
      %69 = vector.shape_cast %67 : vector<64x1xi1> to vector<64x1xi1>
      %70 = vector.broadcast %69 : vector<64x1xi1> to vector<64x128xi1>
      %71 = vector.broadcast %cst_39 : f32 to vector<64x128xf32>
      %72 = arith.select %70, %71, %68 : vector<64x128xi1>, vector<64x128xf32>
      %73 = arith.truncf %72 : vector<64x128xf32> to vector<64x128xbf16>
      %c0_40 = arith.constant 0 : index
      %c0_41 = arith.constant 0 : index
      %74 = vector.load %arg16[%c0_40, %c0_41] : memref<64x256xbf16, #tpu.memory_space<vmem>>, vector<64x128xbf16>
      tpu.vector_store %arg16[%c0_40, %c0_41], %73 {strides = array<i32>} : memref<64x256xbf16, #tpu.memory_space<vmem>>, vector<64x128xbf16>,
    } else {
    }
    %c2_i32 = arith.constant 2 : i32
    %29 = arith.cmpi eq, %arg1, %c2_i32 : i32
    %30 = arith.extui %29 : i1 to i32
    %c0_i32_11 = arith.constant 0 : i32
    %31 = arith.cmpi ne, %30, %c0_i32_11 : i32
    scf.if %31 {
      %c4_i32 = arith.constant 4 : i32
      %66 = vector.broadcast %c4_i32 : i32 to vector<64x1xi32>
      %67 = arith.cmpi slt, %16, %66 : vector<64x1xi32>
      %c4_i32_37 = arith.constant 4 : i32
      %68 = tpu.dynamic_rotate %20 by %c4_i32_37 dim 0 : vector<64x128xf32>, i32 -> vector<64x128xf32>
      %cst_38 = arith.constant 0.000000e+00 : f32
      %69 = vector.shape_cast %67 : vector<64x1xi1> to vector<64x1xi1>
      %70 = vector.broadcast %69 : vector<64x1xi1> to vector<64x128xi1>
      %71 = vector.broadcast %cst_38 : f32 to vector<64x128xf32>
      %72 = arith.select %70, %71, %68 : vector<64x128xi1>, vector<64x128xf32>
      %73 = arith.truncf %72 : vector<64x128xf32> to vector<64x128xbf16>
      %c0_39 = arith.constant 0 : index
      %c0_40 = arith.constant 0 : index
      %74 = vector.load %arg16[%c0_39, %c0_40] : memref<64x256xbf16, #tpu.memory_space<vmem>>, vector<64x128xbf16>
      tpu.vector_store %arg16[%c0_39, %c0_40], %73 {strides = array<i32>} : memref<64x256xbf16, #tpu.memory_space<vmem>>, vector<64x128xbf16>,
    } else {
    }
    %c3_i32 = arith.constant 3 : i32
    %32 = arith.cmpi eq, %arg1, %c3_i32 : i32
    %33 = arith.extui %32 : i1 to i32
    %c0_i32_12 = arith.constant 0 : i32
    %34 = arith.cmpi ne, %33, %c0_i32_12 : i32
    scf.if %34 {
      %c8_i32 = arith.constant 8 : i32
      %66 = vector.broadcast %c8_i32 : i32 to vector<64x1xi32>
      %67 = arith.cmpi slt, %16, %66 : vector<64x1xi32>
      %c8_i32_37 = arith.constant 8 : i32
      %68 = tpu.dynamic_rotate %20 by %c8_i32_37 dim 0 : vector<64x128xf32>, i32 -> vector<64x128xf32>
      %cst_38 = arith.constant 0.000000e+00 : f32
      %69 = vector.shape_cast %67 : vector<64x1xi1> to vector<64x1xi1>
      %70 = vector.broadcast %69 : vector<64x1xi1> to vector<64x128xi1>
      %71 = vector.broadcast %cst_38 : f32 to vector<64x128xf32>
      %72 = arith.select %70, %71, %68 : vector<64x128xi1>, vector<64x128xf32>
      %73 = arith.truncf %72 : vector<64x128xf32> to vector<64x128xbf16>
      %c0_39 = arith.constant 0 : index
      %c0_40 = arith.constant 0 : index
      %74 = vector.load %arg16[%c0_39, %c0_40] : memref<64x256xbf16, #tpu.memory_space<vmem>>, vector<64x128xbf16>
      tpu.vector_store %arg16[%c0_39, %c0_40], %73 {strides = array<i32>} : memref<64x256xbf16, #tpu.memory_space<vmem>>, vector<64x128xbf16>,
    } else {
    }
    %c0_13 = arith.constant 0 : index
    %c0_14 = arith.constant 0 : index
    %35 = vector.load %arg16[%c0_13, %c0_14] : memref<64x256xbf16, #tpu.memory_space<vmem>>, vector<64x256xbf16>
    %c0_15 = arith.constant 0 : index
    %c0_16 = arith.constant 0 : index
    %c0_17 = arith.constant 0 : index
    %36 = vector.load %arg5[%c0_15, %c0_16, %c0_17] : memref<1x256x128xbf16, #tpu.memory_space<vmem>>, vector<1x256x128xbf16>
    %37 = vector.shape_cast %36 : vector<1x256x128xbf16> to vector<256x128xbf16>
    %cst = arith.constant dense<0.000000e+00> : vector<64x128xf32>
    %38 = tpu.matmul %35, %37, %cst {dimension_numbers = #tpu.dot_dimension_numbers<[1], [0], [0], [1], [0, 0, 1, 1], [], []>} : vector<64x256xbf16>, vector<256x128xbf16>, vector<64x128xf32> -> vector<64x128xf32>
    %c0_18 = arith.constant 0 : index
    %c0_19 = arith.constant 0 : index
    %c0_20 = arith.constant 0 : index
    %39 = vector.load %arg6[%c0_18, %c0_19, %c0_20] : memref<1x1x128xf32, #tpu.memory_space<vmem>>, vector<1x1x128xf32>
    %40 = vector.shape_cast %39 : vector<1x1x128xf32> to vector<1x128xf32>
    %41 = vector.broadcast %40 : vector<1x128xf32> to vector<64x128xf32>
    %42 = arith.addf %38, %41 : vector<64x128xf32>
    %43 = math.tanh %42 : vector<64x128xf32>
    %44 = arith.negf %42 : vector<64x128xf32>
    %45 = math.exp %44 : vector<64x128xf32>
    %cst_21 = arith.constant 1.000000e+00 : f32
    %46 = vector.broadcast %cst_21 : f32 to vector<64x128xf32>
    %47 = arith.addf %46, %45 : vector<64x128xf32>
    %48 = arith.divf %46, %47 : vector<64x128xf32>
    %49 = arith.mulf %43, %48 : vector<64x128xf32>
    %50 = arith.truncf %49 : vector<64x128xf32> to vector<64x128xbf16>
    %c0_22 = arith.constant 0 : index
    %c0_23 = arith.constant 0 : index
    %c0_24 = arith.constant 0 : index
    %51 = vector.load %arg7[%c0_22, %c0_23, %c0_24] : memref<1x128x128xbf16, #tpu.memory_space<vmem>>, vector<1x128x128xbf16>
    %52 = vector.shape_cast %51 : vector<1x128x128xbf16> to vector<128x128xbf16>
    %cst_25 = arith.constant dense<0.000000e+00> : vector<64x128xf32>
    %53 = tpu.matmul %50, %52, %cst_25 {dimension_numbers = #tpu.dot_dimension_numbers<[1], [0], [0], [1], [0, 0, 1, 1], [], []>} : vector<64x128xbf16>, vector<128x128xbf16>, vector<64x128xf32> -> vector<64x128xf32>
    %c0_26 = arith.constant 0 : index
    %c0_27 = arith.constant 0 : index
    %c0_28 = arith.constant 0 : index
    %54 = vector.load %arg8[%c0_26, %c0_27, %c0_28] : memref<1x1x128xf32, #tpu.memory_space<vmem>>, vector<1x1x128xf32>
    %55 = vector.shape_cast %54 : vector<1x1x128xf32> to vector<1x128xf32>
    %56 = vector.broadcast %55 : vector<1x128xf32> to vector<64x128xf32>
    %57 = arith.addf %53, %56 : vector<64x128xf32>
    %c0_29 = arith.constant 0 : index
    %c0_30 = arith.constant 0 : index
    %58 = vector.load %arg15[%c0_29, %c0_30] : memref<64x128xf32, #tpu.memory_space<vmem>>, vector<64x128xf32>
    %59 = arith.addf %58, %57 : vector<64x128xf32>
    %c0_31 = arith.constant 0 : index
    %c0_32 = arith.constant 0 : index
    %60 = vector.load %arg15[%c0_31, %c0_32] : memref<64x128xf32, #tpu.memory_space<vmem>>, vector<64x128xf32>
    tpu.vector_store %arg15[%c0_31, %c0_32], %59 {strides = array<i32>} : memref<64x128xf32, #tpu.memory_space<vmem>>, vector<64x128xf32>,
    %61 = arith.addf %20, %57 : vector<64x128xf32>
    %c0_33 = arith.constant 0 : index
    %c0_34 = arith.constant 0 : index
    %62 = vector.load %arg14[%c0_33, %c0_34] : memref<64x128xf32, #tpu.memory_space<vmem>>, vector<64x128xf32>
    tpu.vector_store %arg14[%c0_33, %c0_34], %61 {strides = array<i32>} : memref<64x128xf32, #tpu.memory_space<vmem>>, vector<64x128xf32>,
    %c3_i32_35 = arith.constant 3 : i32
    %63 = arith.cmpi eq, %arg1, %c3_i32_35 : i32
    %64 = arith.extui %63 : i1 to i32
    %c0_i32_36 = arith.constant 0 : i32
    %65 = arith.cmpi ne, %64, %c0_i32_36 : i32
    scf.if %65 {
      %c0_37 = arith.constant 0 : index
      %c0_38 = arith.constant 0 : index
      %66 = vector.load %arg15[%c0_37, %c0_38] : memref<64x128xf32, #tpu.memory_space<vmem>>, vector<64x128xf32>
      %cst_39 = arith.constant 0.000000e+00 : f32
      %67 = vector.broadcast %cst_39 : f32 to vector<64x128xf32>
      %68 = arith.maximumf %66, %67 : vector<64x128xf32>
      %69 = arith.truncf %68 : vector<64x128xf32> to vector<64x128xbf16>
      %c0_40 = arith.constant 0 : index
      %c0_41 = arith.constant 0 : index
      %70 = vector.load %arg9[%c0_40, %c0_41] : memref<128x128xbf16, #tpu.memory_space<vmem>>, vector<128x128xbf16>
      %cst_42 = arith.constant dense<0.000000e+00> : vector<64x128xf32>
      %71 = tpu.matmul %69, %70, %cst_42 {dimension_numbers = #tpu.dot_dimension_numbers<[1], [0], [0], [1], [0, 0, 1, 1], [], []>} : vector<64x128xbf16>, vector<128x128xbf16>, vector<64x128xf32> -> vector<64x128xf32>
      %c0_43 = arith.constant 0 : index
      %c0_44 = arith.constant 0 : index
      %72 = vector.load %arg10[%c0_43, %c0_44] : memref<1x128xf32, #tpu.memory_space<vmem>>, vector<1x128xf32>
      %73 = vector.broadcast %72 : vector<1x128xf32> to vector<64x128xf32>
      %74 = arith.addf %71, %73 : vector<64x128xf32>
      %cst_45 = arith.constant 0.000000e+00 : f32
      %75 = vector.broadcast %cst_45 : f32 to vector<64x128xf32>
      %76 = arith.maximumf %74, %75 : vector<64x128xf32>
      %77 = arith.truncf %76 : vector<64x128xf32> to vector<64x128xbf16>
      %c0_46 = arith.constant 0 : index
      %c0_47 = arith.constant 0 : index
      %78 = vector.load %arg11[%c0_46, %c0_47] : memref<128x128xbf16, #tpu.memory_space<vmem>>, vector<128x128xbf16>
      %cst_48 = arith.constant dense<0.000000e+00> : vector<64x128xf32>
      %79 = tpu.matmul %77, %78, %cst_48 {dimension_numbers = #tpu.dot_dimension_numbers<[1], [0], [0], [1], [0, 0, 1, 1], [], []>} : vector<64x128xbf16>, vector<128x128xbf16>, vector<64x128xf32> -> vector<64x128xf32>
      %c0_49 = arith.constant 0 : index
      %c0_50 = arith.constant 0 : index
      %80 = vector.load %arg12[%c0_49, %c0_50] : memref<1x128xf32, #tpu.memory_space<vmem>>, vector<1x128xf32>
      %81 = vector.broadcast %80 : vector<1x128xf32> to vector<64x128xf32>
      %82 = arith.addf %79, %81 : vector<64x128xf32>
      %c0_51 = arith.constant 0 : index
      %c0_52 = arith.constant 0 : index
      %83 = vector.load %arg13[%c0_51, %c0_52] : memref<64x128xf32, #tpu.memory_space<vmem>>, vector<64x128xf32>
      tpu.vector_store %arg13[%c0_51, %c0_52], %82 {strides = array<i32>} : memref<64x128xf32, #tpu.memory_space<vmem>>, vector<64x128xf32>,
    } else {
    }
    return
  }
  func.func @transform_0(%arg0: i32, %arg1: i32) -> (i32, i32) {
    %c0_i32 = arith.constant 0 : i32
    %c0_i32_0 = arith.constant 0 : i32
    return %arg0, %c0_i32 : i32, i32
  }
  func.func @transform_1(%arg0: i32, %arg1: i32) -> (i32, i32, i32) {
    %c0_i32 = arith.constant 0 : i32
    %c0_i32_0 = arith.constant 0 : i32
    %c0_i32_1 = arith.constant 0 : i32
    %c0_i32_2 = arith.constant 0 : i32
    return %c0_i32, %c0_i32_0, %c0_i32_1 : i32, i32, i32
  }
  func.func @transform_2(%arg0: i32, %arg1: i32) -> (i32, i32) {
    %c0_i32 = arith.constant 0 : i32
    %c0_i32_0 = arith.constant 0 : i32
    %c0_i32_1 = arith.constant 0 : i32
    return %c0_i32, %c0_i32_0 : i32, i32
  }
  func.func @transform_3(%arg0: i32, %arg1: i32) -> (i32, i32, i32) {
    %c0_i32 = arith.constant 0 : i32
    %c0_i32_0 = arith.constant 0 : i32
    %c0_i32_1 = arith.constant 0 : i32
    return %arg1, %c0_i32, %c0_i32_0 : i32, i32, i32
  }
  func.func @transform_4(%arg0: i32, %arg1: i32) -> (i32, i32, i32) {
    %c0_i32 = arith.constant 0 : i32
    %c0_i32_0 = arith.constant 0 : i32
    %c0_i32_1 = arith.constant 0 : i32
    return %arg1, %c0_i32, %c0_i32_0 : i32, i32, i32
  }
  func.func @transform_5(%arg0: i32, %arg1: i32) -> (i32, i32, i32) {
    %c0_i32 = arith.constant 0 : i32
    %c0_i32_0 = arith.constant 0 : i32
    %c0_i32_1 = arith.constant 0 : i32
    return %arg1, %c0_i32, %c0_i32_0 : i32, i32, i32
  }
  func.func @transform_6(%arg0: i32, %arg1: i32) -> (i32, i32, i32) {
    %c0_i32 = arith.constant 0 : i32
    %c0_i32_0 = arith.constant 0 : i32
    %c0_i32_1 = arith.constant 0 : i32
    return %arg1, %c0_i32, %c0_i32_0 : i32, i32, i32
  }
  func.func @transform_7(%arg0: i32, %arg1: i32) -> (i32, i32) {
    %c0_i32 = arith.constant 0 : i32
    %c0_i32_0 = arith.constant 0 : i32
    %c0_i32_1 = arith.constant 0 : i32
    return %c0_i32, %c0_i32_0 : i32, i32
  }
  func.func @transform_8(%arg0: i32, %arg1: i32) -> (i32, i32) {
    %c0_i32 = arith.constant 0 : i32
    %c0_i32_0 = arith.constant 0 : i32
    %c0_i32_1 = arith.constant 0 : i32
    return %c0_i32, %c0_i32_0 : i32, i32
  }
  func.func @transform_9(%arg0: i32, %arg1: i32) -> (i32, i32) {
    %c0_i32 = arith.constant 0 : i32
    %c0_i32_0 = arith.constant 0 : i32
    %c0_i32_1 = arith.constant 0 : i32
    return %c0_i32, %c0_i32_0 : i32, i32
  }
  func.func @transform_10(%arg0: i32, %arg1: i32) -> (i32, i32) {
    %c0_i32 = arith.constant 0 : i32
    %c0_i32_0 = arith.constant 0 : i32
    %c0_i32_1 = arith.constant 0 : i32
    return %c0_i32, %c0_i32_0 : i32, i32
  }
  func.func @transform_11(%arg0: i32, %arg1: i32) -> (i32, i32) {
    %c0_i32 = arith.constant 0 : i32
    %c0_i32_0 = arith.constant 0 : i32
    return %arg0, %c0_i32 : i32, i32
  }
}

</mosaic_0001>

<bundles_post_ra>
// kernel: tpu_custom_call.1
= control target key start
LH: loop header
LB: loop body
LE: loop exit
PB: predicated region body
PF: predicated region fallthrough
CT: control target
= control target key end

     0   :  { %s3936_s0 = inlined_call_operand.hbm [shape: f32[256,128], index: 0, kind: input, shape index: {}]   ;;  %s3937_s1 = inlined_call_operand.hbm [shape: bf16[2,128,128], index: 1, kind: input, shape index: {}]   ;;  %s3938_s2 = inlined_call_operand.vmem [shape: f32[1,128], index: 2, kind: input, shape index: {}]   ;;  %s3939_s3 = inlined_call_operand.hbm [shape: bf16[4,256,128], index: 3, kind: input, shape index: {}]   ;;  %s3940_s4 = inlined_call_operand.hbm [shape: f32[4,1,128], index: 4, kind: input, shape index: {}]   ;;  %s3941_s5 = inlined_call_operand.hbm [shape: bf16[4,128,128], index: 5, kind: input, shape index: {}]   ;;  %s3942_s6 = inlined_call_operand.vmem [shape: f32[4,1,128], index: 6, kind: input, shape index: {}]   ;;  %s3943_s7 = inlined_call_operand.hbm [shape: bf16[128,128], index: 7, kind: input, shape index: {}]   ;;  %s3944_s8 = inlined_call_operand.vmem [shape: f32[1,128], index: 8, kind: input, shape index: {}]   ;;  %s3945_s9 = inlined_call_operand.hbm [shape: bf16[128,128], index: 9, kind: input, shape index: {}]   ;;  %s3946_s10 = inlined_call_operand.vmem [shape: f32[1,128], index: 10, kind: input, shape index: {}]   ;;  %s3947_s11 = inlined_call_operand.hbm [shape: f32[256,128], index: 11, kind: output, shape index: {}]  }
   0x1   :  { %3960 = sst [smem:[#allocation33_spill]] %s3936_s0 }
   0x2   :  { %3961 = sst [smem:[#allocation34_spill]] %s3937_s1 }
   0x3   :  { %3962 = sst [smem:[#allocation35_spill]] %s3938_s2 }
   0x4   :  { %3963 = sst [smem:[#allocation36_spill]] %s3939_s3 }
   0x5   :  { %3964 = sst [smem:[#allocation37_spill]] %s3940_s4 }
   0x6   :  { %3965 = sst [smem:[#allocation38_spill]] %s3942_s6 }
   0x7   :  { %3966 = sst [smem:[#allocation39_spill]] %s3943_s7 }
   0x8   :  { %3967 = sst [smem:[#allocation40_spill]] %s3944_s8 }
   0x9   :  { %3968 = sst [smem:[#allocation41_spill]] %s3946_s10 }
   0xa   :  { %3969 = sst [smem:[#allocation42_spill]] %s3947_s11 }
   0xb   :  { %16 = vsyncpa [#allocation6], 0 }
   0xc   :  { %18 = vsyncpa [#allocation6 + $0x1], 0 }
   0xd   :  { %19 = vsyncpa [#allocation9], 0 }
   0xe   :  { %20 = vsyncpa [#allocation15], 0 }
   0xf   :  { %21 = vsyncpa [#allocation7], 0 }
  0x10   :  { %23 = vsyncpa [#allocation7 + $0x1], 0  ;;  %s3288_s17 = smov 0   ;;  %s3290_s18 = smov 0  }
  0x11   :  { %s3292_s19 = smov 0   ;;  %s3294_s20 = smov 0  }
  0x12   :  { %s3296_s21 = smov 0   ;;  %s3298_s22 = smov 0  }
  0x13   :  { %s3300_s23 = smov 0   ;;  %s3302_s24 = smov 0  }
  0x14   :  { %s3304_s25 = smov 0   ;;  %s3306_s26 = smov 0  }
  0x15   :  { %s3308_s27 = smov 0  }
  0x16 LB: > { %3970 = sst [smem:[#allocation23_spill]] %s3182_s19  ;;  %s2245_s28 = sadd.s32 4294967294, %s3214_s27   ;;  %s3214_s27 = sphi %s3308_s27, %s29_s27   ;;  %s3210_s26 = sphi %s3306_s26, %s4018_s26   ;;  %s3206_s25 = sphi %s3304_s25, %s4024_s25   ;;  %s3202_s24 = sphi %s3302_s24, %s4016_s24   ;;  %s3198_s23 = sphi %s3300_s23, %s4023_s23   ;;  %s3194_s22 = sphi %s3298_s22, %s4015_s22   ;;  %s3190_s21 = sphi %s3296_s21, %s4022_s21   ;;  %s3186_s20 = sphi %s3294_s20, %s4021_s20   ;;  %s3182_s19 = sphi %s3292_s19, %s4013_s19   ;;  %s3178_s18 = sphi %s3290_s18, %s4020_s18   ;;  %s3174_s17 = sphi %s3288_s17, %s4019_s17  }
  0x17   : > { %3971 = sst [smem:[#allocation24_spill]] %s3186_s20  ;;  %s38_s29 = sadd.s32 1, %s3206_s25 }
  0x18   : > { %3972 = sst [smem:[#allocation25_spill]] %s3194_s22  ;;  %p39_p0 = scmp.ge.s32.totalorder %s38_s29, 4 }
  0x19   : > { %3973 = sst [smem:[#allocation26_spill]] %s3202_s24  ;;  %s41_s30 = sadd.s32 1, %s3210_s26 }
  0x1a   : > { %3974 = sst [smem:[#allocation27_spill]] %s3210_s26  ;;  %s48_s12 = sadd.s32 1, %s3194_s22 }
  0x1b   : > { %p55_p1 = scmp.ne.s32.totalorder %s3194_s22, %s3190_s21  ;;  %s4026_s29 = smov (%p39_p0, %s38_s29), 0 }
  0x1c   : > { %3975 = sst [smem:[#allocation28_spill]] %s4026_s29  ;;  %s4028_s30 = smov (!%p39_p0, %s41_s30), %s3210_s26 }
  0x1d   : > { %p56_p2 = scmp.eq.s32.totalorder %s3214_s27, 0  ;;  %p61_p3 = scmp.ne.s32.totalorder %s3190_s21, %s3186_s20 }
  0x1e   : > { %p43_p4 = scmp.ge.s32.totalorder %s4028_s30, 4  ;;  %s113_s13 = ssub.s32 %s3206_s25, %s4026_s29 }
  0x1f   : > { %p3362_p5 = por %p56_p2, %p55_p1  ;;  %p3366_p6 = scmp.eq.s32.totalorder %s113_s13, 0 }
  0x20   : > { %s4030_s30 = smov (%p43_p4, %s4028_s30), 0  ;;  %p321_p7 = scmp.eq.s32.totalorder %s2245_s28, 15 }
  0x21   : > { %3978 = sst [smem:[#allocation29_spill]] %s4030_s30  ;;  %s45_s16 = ssub.s32 %s3210_s26, %s4030_s30 }
  0x22   : > { %p2708_p8 = scmp.lt.s32.totalorder %s3214_s27, 16  ;;  %p46_p9 = scmp.eq.s32.totalorder %s45_s16, 0 }
  0x23   : > { %p3378_p10 = por %p321_p7, %p61_p3  ;;  %s392_s11 = sand.u32 1, %s3214_s27  }
  0x24   : > { %s394_s13 = sand.u32 1, %s3194_s22   ;;  %s2547_s10 = sshll.u32 %s3210_s26, 6 }
  0x25   : > { %s3979_s29 = scalar_select %p3378_p10, 1, 0 }
  0x26   : > { %s3385_s24 = scalar_select %p46_p9, %s3194_s22, %s48_s12  }
  0x27   : > { %3980 = sst [smem:[#allocation30_spill]] %s3979_s29  ;;  %s2251_s28 = sshll.u32 %s394_s13, 6 }
  0x28   : > { %3981 = sst [smem:[#allocation31_spill]] %s3385_s24  ;;  %s396_s2 = scalar_lea.vmem [#allocation5], %s2251_s28 }
  0x29   : > { %s3982_s0 = sld [smem:[#allocation33_spill]]  ;;  %s404_s29 = sshll.u32 %s396_s2, 4  ;;  %s405_s29 = int_to_ptr.vmem [resolvable:$true] %s404_s29 }
  0x2a   : > { %p2689_p11 = pnand %p2708_p8, %p3362_p5  ;;  %s3395_s12 = scalar_lea.sflag [#allocation6], %s392_s11 }
  0x2b   : > { %s3216_s13 = smov 128   ;;  %s3217_s26 = smov 8  }
  0x2c   : > { %s116_s24 = sadd.s32 1, %s3182_s19  ;;  %p123_p12 = scmp.ne.s32.totalorder %s3182_s19, %s3178_s18 }
  0x2d   : > { %s3404_s8 = scalar_select %p3366_p6, %s3182_s19, %s116_s24  }
  0x2e   : > { %p125_p13 = por %p123_p12, %p56_p2  ;;  %s3409_s2 = sand.u32 1, %s3182_s19  }
  0x2f   : > { %s401_s16 = scalar_lea.hbm %s3982_s0, %s2547_s10  ;;  %3983 = sst [smem:[#allocation32_spill]] %s3404_s8 }
  0x30   : > { %s402_s6 = sshll.u32 %s401_s16, 4  ;;  %s2548_s10 = sshll.u32 %s3206_s25, 7  ;;  %s403_s6 = int_to_ptr.hbm [resolvable:$true] %s402_s6 }
  0x31   : > { %2691 = dma.hbm_to_vmem [thread:$0]  (!%p2689_p11), %s403_s6, 1024, %s405_s29, %s3395_s12, %s3216_s13, %s3216_s13, %s3217_s26  }
  0x32   : > { %s2254_s11 = sshll.u32 %s3409_s2, 7  ;;  %s3984_s3 = sld [smem:[#allocation36_spill]] }
  0x33   : > { %s418_s24 = scalar_lea.vmem [#allocation10], %s2254_s11  ;;  %p3418_p0 = pnand %p2708_p8, %p125_p13 }
  0x34   : > { %s426_s29 = sshll.u32 %s418_s24, 4  ;;  %s3953_s28 = smov 64   ;;  %s427_s29 = int_to_ptr.vmem [resolvable:$true] %s426_s29 }
  0x35   : > { %s3955_s16 = smov 4   ;;  %s3429_s13 = sadd.s32 4294967295, %s3214_s27  }
  0x36   : > { %p62_p2 = scmp.eq.s32.totalorder %s3429_s13, 0  ;;  %p129_p4 = scmp.ne.s32.totalorder %s3178_s18, %s3174_s17 }
  0x37   : > { %p315_p5 = scmp.eq.s32.totalorder %s3429_s13, 15  ;;  %p2246_p6 = scmp.ge.s32.totalorder %s3214_s27, 1 }
  0x38   : > { %s423_s6 = scalar_lea.hbm %s3984_s3, %s2548_s10  ;;  %p3441_p7 = por %p62_p2, %p61_p3 }
  0x39   : > { %s424_s26 = sshll.u32 %s423_s6, 4  ;;  %p3447_p8 = por %p129_p4, %p62_p2  ;;  %s425_s26 = int_to_ptr.hbm [resolvable:$true] %s424_s26 }
  0x3a   : > { %2694 = dma.hbm_to_vmem [thread:$0]  (!%p3418_p0), %s425_s26, 2048, %s427_s29, %s3395_s12, %s3953_s28, %s3953_s28, %s3955_s16  }
  0x3b   : > { %p3454_p9 = por %p315_p5, %p55_p1  ;;  %p328_p11 = scmp.lt.s32.totalorder %s3214_s27, 17 }
  0x3c   : > { %s3989_s1 = sld [smem:[#allocation34_spill]]  ;;  %s3220_s24 = smov [#allocation8]  }
  0x3d   : > { %p3462_p3 = pnand %p2246_p6, %p328_p11  ;;  %s341_s29 = sshll.u32 %s3220_s24, 4  ;;  %s342_s29 = int_to_ptr.vmem [resolvable:$true] %s341_s29 }
  0x3e   : > { %s3991_s4 = sld [smem:[#allocation37_spill]]  ;;  %s3993_s24 = smov 4  }
  0x3f   : > { %p2678_p12 = pneg %p3462_p3  ;;  %s3994_s22 = smov 64  }
  0x40   : > { %s3995_s7 = sld [smem:[#allocation39_spill]]  ;;  %s373_s20 = sshll.u32 %s3945_s9, 4  ;;  %s374_s20 = int_to_ptr.hbm [resolvable:$true] %s373_s20 }
  0x41   : > { %p3474_p1 = pnand %p2678_p12, %p62_p2 }
  0x42   : > { %s339_s6 = sshll.u32 %s3989_s1, 4  ;;  %s439_s1 = scalar_lea.vmem [#allocation11], %s3409_s2  ;;  %s340_s6 = int_to_ptr.hbm [resolvable:$true] %s339_s6 }
  0x43   : > { %s446_s3 = sshll.u32 %s439_s1, 4  ;;  %s447_s3 = int_to_ptr.vmem [resolvable:$true] %s446_s3 }
  0x44   : > { %s442_s0 = scalar_lea.hbm %s3991_s4, %s3206_s25 }
  0x45   : > { %s444_s14 = sshll.u32 %s442_s0, 4  ;;  %s3221_s0 = smov [#allocation13]   ;;  %s445_s14 = int_to_ptr.hbm [resolvable:$true] %s444_s14 }
  0x46   : > { %2681 = dma.hbm_to_vmem [thread:$0]  (!%p3474_p1), %s340_s6, 2048, %s342_s29, [#allocation9], %s3994_s22, %s3994_s22, %s3993_s24  }
  0x47   : > { %2697 = dma.hbm_to_vmem [thread:$0]  (!%p3418_p0), %s445_s14, 16, %s447_s3, %s3395_s12  }
  0x48   : > { %s356_s4 = sshll.u32 %s3995_s7, 4  ;;  %s358_s8 = sshll.u32 %s3221_s0, 4  ;;  %s357_s4 = int_to_ptr.hbm [resolvable:$true] %s356_s4  ;;  %s359_s8 = int_to_ptr.vmem [resolvable:$true] %s358_s8 }
  0x49   : > { %2684 = dma.hbm_to_vmem [thread:$0]  (!%p3474_p1), %s357_s4, 1024, %s359_s8, [#allocation9], %s3994_s22, %s3994_s22, %s3993_s24  }
  0x4a   : > { %s3222_s3 = smov [#allocation14]   ;;  %s2257_s29 = sshll.u32 %s3409_s2, 6 }
  0x4b   : > { %s375_s6 = sshll.u32 %s3222_s3, 4  ;;  %s2549_s14 = sshll.u32 %s3206_s25, 6  ;;  %s376_s6 = int_to_ptr.vmem [resolvable:$true] %s375_s6 }
  0x4c   : > { %2687 = dma.hbm_to_vmem [thread:$0]  (!%p3474_p1), %s374_s20, 1024, %s376_s6, [#allocation15], %s3994_s22, %s3994_s22, %s3993_s24  }
  0x4d   : > { %s457_s19 = scalar_lea.vmem [#allocation12], %s2257_s29  ;;  %s462_s1 = scalar_lea.hbm %s3941_s5, %s2549_s14 }
  0x4e   : > { %s465_s28 = sshll.u32 %s457_s19, 4  ;;  %s463_s7 = sshll.u32 %s462_s1, 4  ;;  %s466_s28 = int_to_ptr.vmem [resolvable:$true] %s465_s28  ;;  %s464_s7 = int_to_ptr.hbm [resolvable:$true] %s463_s7 }
  0x4f   : > { %2700 = dma.hbm_to_vmem [thread:$0]  (!%p3418_p0), %s464_s7, 1024, %s466_s28, %s3395_s12, %s3994_s22, %s3994_s22, %s3993_s24  }
  0x50   : > { %483 = sbr.rel (%p3462_p3) target bundleno = 1136 (0x470), region = 64  ;;  %s485_s4 = sand.u32 (!%p3462_p3), 1, %s3429_s13  }
  0x51   : > { %s487_s20 = sand.u32 (!%p3462_p3), 1, %s3190_s21   ;;  %s486_s2 = scalar_lea.sflag (!%p3462_p3), [#allocation6], %s485_s4 }
  0x52   : > { %s2261_s8 = sshll.u32 (!%p3462_p3), %s487_s20, 6 }
  0x53   : > { %s3520_s17 = scalar_lea.vmem (!%p3462_p3), [#allocation5], %s2261_s8 }
  0x55   : > { %3149 = dma.done.wait (%p3441_p7), %s486_s2, 1024  }
  0x56   : > { %3151 = vsyncadd (%p3441_p7), %s486_s2, 4294966272 }
  0x57   : > { %3153 = dma.done.wait (%p62_p2), [#allocation9], 2048  }
  0x58   : > { %3155 = vsyncadd (%p62_p2), [#allocation9], 4294965248  ;;  %s3531_s7 = sand.u32 1, %s3178_s18  }
  0x59   : > { %s2263_s22 = sshll.u32 %s3531_s7, 7 }
  0x5a   : > { %s3534_s12 = scalar_lea.vmem [#allocation10], %s2263_s22 }
  0x5b   : > { %3157 = dma.done.wait (%p3447_p8), %s486_s2, 3088  }
  0x5c   : > { %3159 = vsyncadd (%p3447_p8), %s486_s2, 4294964208  ;;  %s2264_s15 = sshll.u32 %s3531_s7, 6  ;;  %s513_s10 = scalar_lea.vmem [#allocation11], %s3531_s7 }
  0x5d   : > { %s3542_s26 = scalar_lea.vmem [#allocation12], %s2264_s15 }
  0x5e   : > { %3161 = dma.done.wait (%p62_p2), [#allocation9], 1024  }
  0x5f   : > { %3163 = vsyncadd (%p62_p2), [#allocation9], 4294966272 }
  0x60   : > { %3165 = dma.done.wait (%p62_p2), [#allocation15], 1024  }
  0x61   : > { %3167 = vsyncadd (%p62_p2), [#allocation15], 4294966272  ;;  %p591_p13 = scmp.lt.s32.totalorder %s3198_s23, 3  ;;  %v595_v0 = vlaneseq  ;;  %s3996_s6 = sld [smem:[#allocation38_spill]] }
  0x62   : > { %s3565_s14 = scalar_lea.vmem [#allocation16], %s2261_s8  ;;  %p2268_p0 = scmp.ne.s32.totalorder %s3198_s23, 0 }
  0x63   : > { %s3554_s11 = scalar_select %p591_p13, %s3198_s23, 3  ;;  %v3556_v1 = vshrl.u32 %v595_v0, 7 }
  0x64   : > { %703 = sbr.rel (%p2268_p0) target bundleno = 299 (0x12b), region = 96  ;;  %s3997_s28 = sld [smem:[#allocation35_spill]] (!%p2268_p0) }
  0x65   : > { %v3563_v2 = vand.u32 63, %v3556_v1 }
  0x67   : > { %s593_s29 = scalar_lea.vmem %s3996_s6, %s3554_s11 }
  0x69   : > { %v2565_v3 = vld [vmem:[#allocation8 + $0x78] sm:$0xff]  ;;  %v2564_v5 = vld [vmem:[#allocation8 + $0x70] sm:$0xff]  ;;  %v2563_v7 = vld [vmem:[#allocation8 + $0x68] sm:$0xff]  ;;  %vm728_vm0 = vcmp.lt.s32.totalorder %v3556_v1, 1  ;;  %vm2615_vm1 = vcmp.ge.s32.totalorder %v3563_v2, 1  ;;  %vm3223_vm2 = vmmov 1  }
  0x6a   : > { %v2557_v4 = vld [vmem:[#allocation8 + $0x38] sm:$0xff]  ;;  %850 = vmatpush.bf16.msra.mxu0 %v2565_v3  ;;  %2616 = vmatpush.bf16.msra.mxu2 %v2565_v3  ;;  %v2556_v6 = vld [vmem:[#allocation8 + $0x30] sm:$0xff]  ;;  %v2555_v8 = vld [vmem:[#allocation8 + $0x28] sm:$0xff]  ;;  %v3224_v56 = vmov 0.0  }
  0x6b   : > { %927 = vmatpush.bf16.msra.mxu1 %v2557_v4  ;;  %2624 = vmatpush.bf16.msra.mxu3 %v2557_v4  ;;  %v2562_v9 = vld [vmem:[#allocation8 + $0x60] sm:$0xff]  ;;  %v2561_v11 = vld [vmem:[#allocation8 + $0x58] sm:$0xff]  ;;  %v2560_v13 = vld [vmem:[#allocation8 + $0x50] sm:$0xff]  ;;  %976 = vst [vmem:[#allocation3] sm:$0xff] %v3224_v56 }
  0x6c   : > { %v2554_v10 = vld [vmem:[#allocation8 + $0x20] sm:$0xff]  ;;  %v2553_v12 = vld [vmem:[#allocation8 + $0x18] sm:$0xff]  ;;  %v2552_v14 = vld [vmem:[#allocation8 + $0x10] sm:$0xff]  ;;  %977 = vst [vmem:[#allocation3 + $0x18] sm:$0xff] %v3224_v56 }
  0x6d   : > { %v704_v15 = vld [vmem:[%s3520_s17] sm:$0xff]  ;;  %v705_v16 = vld [vmem:[%s3520_s17 + $0x8] sm:$0xff]  ;;  %v711_v19 = vld [vmem:[%s3520_s17 + $0x38] sm:$0xff]  ;;  %978 = vst [vmem:[#allocation3 + $0x10] sm:$0xff] %v3224_v56 }
  0x6e   : > { %851 = vmatpush.bf16.msra.mxu0 %v2564_v5  ;;  %2617 = vmatpush.bf16.msra.mxu2 %v2564_v5  ;;  %v708_v17 = vld [vmem:[%s3520_s17 + $0x20] sm:$0xff]  ;;  %v709_v18 = vld [vmem:[%s3520_s17 + $0x28] sm:$0xff]  ;;  %v707_v20 = vld [vmem:[%s3520_s17 + $0x18] sm:$0xff]  ;;  %v720_v22 = vrot.slane %v704_v15, 7  ;;  %v721_v23 = vrot.slane %v705_v16, 7  ;;  %v727_v27 = vrot.slane %v711_v19, 7  ;;  %v781_v35 = vpack.c.bf16 %v705_v16, %v704_v15 }
  0x6f   : > { %928 = vmatpush.bf16.msra.mxu1 %v2556_v6  ;;  %2625 = vmatpush.bf16.msra.mxu3 %v2556_v6  ;;  %v2559_v21 = vld [vmem:[#allocation8 + $0x48] sm:$0xff]  ;;  %v724_v25 = vrot.slane %v708_v17, 7  ;;  %v725_v26 = vrot.slane %v709_v18, 7  ;;  %v723_v28 = vrot.slane %v707_v20, 7  ;;  %v2558_v29 = vld [vmem:[#allocation8 + $0x40] sm:$0xff]  ;;  %v783_v36 = vpack.c.bf16 %v709_v18, %v708_v17  ;;  %vm2334_vm3 = vmpackc.low %vm3223_vm2, %vm2615_vm1  ;;  %979 = vst [vmem:[#allocation3 + $0x20] sm:$0xff] %v3224_v56 }
  0x70   : > { %v2551_v24 = vld [vmem:[#allocation8 + $0x8] sm:$0xff]  ;;  %v735_v30 = vsel %vm728_vm0, %v720_v22, %v721_v23  ;;  %v2550_v31 = vld [vmem:[#allocation8] sm:$0xff]  ;;  %v736_v32 = vsel %vm728_vm0, %v727_v27, %v720_v22  ;;  %v706_v39 = vld [vmem:[%s3520_s17 + $0x10] sm:$0xff]  ;;  %980 = vst [vmem:[#allocation3 + $0x28] sm:$0xff] %v3224_v56 }
  0x71   : > { %v731_v33 = vsel %vm728_vm0, %v724_v25, %v725_v26  ;;  %v732_v34 = vsel %vm728_vm0, %v723_v28, %v724_v25  ;;  %v2335_v37 = vpack.c.bf16 %v735_v30, %v736_v32  ;;  %v710_v40 = vld [vmem:[%s3520_s17 + $0x30] sm:$0xff]  ;;  %v722_v41 = vrot.slane %v706_v39, 7  ;;  %v2813_v52 = vld [vmem:[%s3997_s28] ss:$0 sm:$0xff]  ;;  %981 = vst [vmem:[#allocation3 + $0x8] sm:$0xff] %v3224_v56 }
  0x72   : > { %852 = vmatpush.bf16.msra.mxu0 %v2563_v7  ;;  %2618 = vmatpush.bf16.msra.mxu2 %v2563_v7  ;;  %v763_v38 = vpack.c.bf16 %v731_v33, %v732_v34  ;;  %v726_v42 = vrot.slane %v710_v40, 7  ;;  %v782_v47 = vpack.c.bf16 %v707_v20, %v706_v39  ;;  %v784_v48 = vpack.c.bf16 %v711_v19, %v710_v40 }
  0x73   : > { %929 = vmatpush.bf16.msra.mxu1 %v2555_v8  ;;  %2626 = vmatpush.bf16.msra.mxu3 %v2555_v8  ;;  %v733_v43 = vsel %vm728_vm0, %v722_v41, %v723_v28  ;;  %v734_v44 = vsel %vm728_vm0, %v721_v23, %v722_v41  ;;  %982 = vst [vmem:[#allocation3 + $0x30] sm:$0xff] %v3224_v56 }
  0x74   : > { %v729_v45 = vsel %vm728_vm0, %v726_v42, %v727_v27  ;;  %v730_v46 = vsel %vm728_vm0, %v725_v26, %v726_v42  ;;  %v762_v49 = vpack.c.bf16 %v733_v43, %v734_v44  ;;  %983 = vst [vmem:[#allocation3 + $0x38] sm:$0xff] %v3224_v56 }
  0x75   : > { %v764_v50 = vpack.c.bf16 %v729_v45, %v730_v46 }
  0x76   : > { %853 = vmatpush.bf16.msra.mxu0 %v2562_v9  ;;  %2619 = vmatpush.bf16.msra.mxu2 %v2562_v9 }
  0x77   : > { %930 = vmatpush.bf16.msra.mxu1 %v2554_v10  ;;  %2627 = vmatpush.bf16.msra.mxu3 %v2554_v10 }
  0x7a   : > { %854 = vmatpush.bf16.msra.mxu0 %v2561_v11  ;;  %2620 = vmatpush.bf16.msra.mxu2 %v2561_v11 }
  0x7b   : > { %931 = vmatpush.bf16.msra.mxu1 %v2553_v12  ;;  %2628 = vmatpush.bf16.msra.mxu3 %v2553_v12 }
  0x7e   : > { %855 = vmatpush.bf16.msra.mxu0 %v2560_v13  ;;  %2621 = vmatpush.bf16.msra.mxu2 %v2560_v13 }
  0x7f   : > { %932 = vmatpush.bf16.msra.mxu1 %v2552_v14  ;;  %2629 = vmatpush.bf16.msra.mxu3 %v2552_v14 }
  0x82   : > { %856 = vmatpush.bf16.msra.mxu0 %v2559_v21  ;;  %2622 = vmatpush.bf16.msra.mxu2 %v2559_v21 }
  0x83   : > { %933 = vmatpush.bf16.msra.mxu1 %v2551_v24  ;;  %2630 = vmatpush.bf16.msra.mxu3 %v2551_v24 }
  0x86   : > { %857 = vmatpush.bf16.msra.mxu0 %v2558_v29  ;;  %2623 = vmatpush.bf16.msra.mxu2 %v2558_v29 }
  0x87   : > { %934 = vmatpush.bf16.msra.mxu1 %v2550_v31  ;;  %2631 = vmatpush.bf16.msra.mxu3 %v2550_v31 }
  0x89   : > { %858 = vmatmul.bf16.vlgmr.msra.gmra.mxu0 %v781_v35  ;;  %868 = vmatmul.bf16.vlgmr.msra.gmra.mxu2 %v783_v36 }
  0x8a   : > { %2336 = vmatmul.msk.bf16.vlgmr.msra.gmra.mxu1 %vm2334_vm3, %v2335_v37  ;;  %945 = vmatmul.bf16.vlgmr.msra.gmra.mxu3 %v763_v38 }
  0x99   : > { %863 = vmatmul.bf16.gmra.mxu0 %v782_v47  ;;  %873 = vmatmul.bf16.gmra.mxu2 %v784_v48 }
  0x9a   : > { %940 = vmatmul.bf16.gmra.mxu1 %v762_v49  ;;  %950 = vmatmul.bf16.gmra.mxu3 %v764_v50 }
 0x106   : > { %v859_v51 = vpop.f32.mrf.mxu0 }
 0x107   : > { %v936_v53 = vpop.f32.mrf.mxu1 }
 0x108   : > { %v937_v54 = vadd.f32 %v936_v53, %v859_v51 }
 0x10a   : > { %v960_v55 = vadd.f32 %v2813_v52, %v937_v54 }
 0x10c   : > { %968 = vst [vmem:[#allocation2 + $0x30] sm:$0xff] %v960_v55  ;;  %v869_v57 = vpop.f32.mrf.mxu2 }
 0x10d   : > { %v946_v58 = vpop.f32.mrf.mxu3 }
 0x10e   : > { %v947_v59 = vadd.f32 %v946_v58, %v869_v57  ;;  %v861_v60 = vpop.f32.mrf.mxu0 }
 0x10f   : > { %v938_v61 = vpop.f32.mrf.mxu1 }
 0x110   : > { %v964_v62 = vadd.f32 %v2813_v52, %v947_v59  ;;  %v939_v63 = vadd.f32 %v938_v61, %v861_v60 }
 0x112   : > { %972 = vst [vmem:[#allocation2 + $0x8] sm:$0xff] %v964_v62  ;;  %v961_v0 = vadd.f32 %v2813_v52, %v939_v63 }
 0x114   : > { %969 = vst [vmem:[#allocation2] sm:$0xff] %v961_v0  ;;  %v871_v3 = vpop.f32.mrf.mxu2 }
 0x115   : > { %v948_v4 = vpop.f32.mrf.mxu3 }
 0x116   : > { %v949_v5 = vadd.f32 %v948_v4, %v871_v3  ;;  %v864_v6 = vpop.f32.mrf.mxu0 }
 0x117   : > { %v941_v7 = vpop.f32.mrf.mxu1 }
 0x118   : > { %v965_v8 = vadd.f32 %v2813_v52, %v949_v5  ;;  %v942_v9 = vadd.f32 %v941_v7, %v864_v6 }
 0x11a   : > { %973 = vst [vmem:[#allocation2 + $0x20] sm:$0xff] %v965_v8  ;;  %v962_v10 = vadd.f32 %v2813_v52, %v942_v9 }
 0x11c   : > { %970 = vst [vmem:[#allocation2 + $0x18] sm:$0xff] %v962_v10  ;;  %v874_v11 = vpop.f32.mrf.mxu2 }
 0x11d   : > { %v951_v12 = vpop.f32.mrf.mxu3 }
 0x11e   : > { %v952_v13 = vadd.f32 %v951_v12, %v874_v11  ;;  %v866_v14 = vpop.f32.mrf.mxu0 }
 0x11f   : > { %v943_v15 = vpop.f32.mrf.mxu1 }
 0x120   : > { %v966_v16 = vadd.f32 %v2813_v52, %v952_v13  ;;  %v944_v17 = vadd.f32 %v943_v15, %v866_v14 }
 0x122   : > { %974 = vst [vmem:[#allocation2 + $0x28] sm:$0xff] %v966_v16  ;;  %v963_v18 = vadd.f32 %v2813_v52, %v944_v17 }
 0x124   : > { %971 = vst [vmem:[#allocation2 + $0x10] sm:$0xff] %v963_v18  ;;  %v876_v19 = vpop.f32.mrf.mxu2 }
 0x125   : > { %v953_v20 = vpop.f32.mrf.mxu3 }
 0x126   : > { %v954_v21 = vadd.f32 %v953_v20, %v876_v19 }
 0x128   : > { %v967_v22 = vadd.f32 %v2813_v52, %v954_v21 }
 0x12a   : > { %975 = vst [vmem:[#allocation2 + $0x38] sm:$0xff] %v967_v22 }
 0x12b PF: > { %v3599_v23 = vld [vmem:[#allocation2 + $0x30] sm:$0xff]  ;;  %v3601_v24 = vld [vmem:[#allocation2] sm:$0xff]  ;;  %v3603_v25 = vld [vmem:[#allocation2 + $0x18] sm:$0xff] }
 0x12c   : > { %v3607_v26 = vpack.c.bf16 %v3599_v23, %v3599_v23  ;;  %v3611_v27 = vpack.c.bf16 %v3601_v24, %v3601_v24  ;;  %v3615_v28 = vpack.c.bf16 %v3603_v25, %v3603_v25  ;;  %v3617_v29 = vld [vmem:[#allocation2 + $0x10] sm:$0xff]  ;;  %v3619_v30 = vld [vmem:[#allocation2 + $0x8] sm:$0xff]  ;;  %v3621_v31 = vld [vmem:[#allocation2 + $0x20] sm:$0xff] }
 0x12d   : > { %v3625_v32 = vpack.c.bf16 %v3617_v29, %v3617_v29  ;;  %v3627_v33 = vld [vmem:[#allocation2 + $0x28] sm:$0xff]  ;;  %v3632_v34 = vpack.c.bf16 %v3619_v30, %v3619_v30  ;;  %v3639_v36 = vpack.c.bf16 %v3621_v31, %v3621_v31 }
 0x12e   : > { %1000 = vst [vmem:[#allocation4 + $0x4] sm:$0xf] %v3607_v26  ;;  %v3644_v37 = vpack.c.bf16 %v3627_v33, %v3627_v33 }
 0x12f   : > { %1001 = vst [vmem:[#allocation4 + $0xc] sm:$0xf] %v3611_v27 }
 0x130   : > { %1002 = vst [vmem:[#allocation4 + $0x14] sm:$0xf] %v3615_v28 }
 0x131   : > { %v3634_v35 = vld [vmem:[#allocation2 + $0x38] sm:$0xff]  ;;  %1003 = vst [vmem:[#allocation4 + $0x1c] sm:$0xf] %v3625_v32  ;;  %1010 = sbr.rel (%p2268_p0) target bundleno = 324 (0x144), region = 100 }
 0x132   : > { %v999_v38 = vpack.c.bf16 %v3634_v35, %v3634_v35  ;;  %1004 = vst [vmem:[#allocation4 + $0x24] sm:$0xf] %v3632_v34 }
 0x133   : > { %1005 = vst [vmem:[#allocation4 + $0x2c] sm:$0xf] %v3639_v36 }
 0x134   : > { %1006 = vst [vmem:[#allocation4 + $0x34] sm:$0xf] %v3644_v37 }
 0x135   : > { %1007 = vst [vmem:[#allocation4 + $0x3c] sm:$0xf] %v999_v38 }
 0x136   : > { %vm1011_vm4 = vcmp.lt.s32.totalorder %v3563_v2, 1  ;;  %v1019_v39 = vrot.slane %v3599_v23, 7  ;;  %v1026_v40 = vrot.slane %v3634_v35, 7  ;;  %vm1027_vm5 = vcmp.lt.s32.totalorder %v3556_v1, 1 }
 0x137   : > { %v1020_v41 = vrot.slane %v3601_v24, 7  ;;  %v1021_v42 = vrot.slane %v3603_v25, 7  ;;  %v1022_v43 = vrot.slane %v3617_v29, 7  ;;  %v1023_v44 = vrot.slane %v3619_v30, 7 }
 0x138   : > { %v1035_v45 = vsel %vm1027_vm5, %v1026_v40, %v1019_v39  ;;  %v1024_v46 = vrot.slane %v3621_v31, 7  ;;  %v1025_v47 = vrot.slane %v3627_v33, 7 }
 0x139   : > { %v1052_v48 = vsel %vm1011_vm4, 0.0, %v1035_v45  ;;  %v1034_v49 = vsel %vm1027_vm5, %v1019_v39, %v1020_v41  ;;  %v1033_v50 = vsel %vm1027_vm5, %v1020_v41, %v1021_v42  ;;  %v1032_v51 = vsel %vm1027_vm5, %v1021_v42, %v1022_v43 }
 0x13a   : > { %v1060_v52 = vpack.c.bf16 %v1052_v48, %v1052_v48  ;;  %v1061_v53 = vpack.c.bf16 %v1034_v49, %v1034_v49  ;;  %v1062_v54 = vpack.c.bf16 %v1033_v50, %v1033_v50  ;;  %v1063_v55 = vpack.c.bf16 %v1032_v51, %v1032_v51 }
 0x13b   : > { %v1031_v56 = vsel %vm1027_vm5, %v1022_v43, %v1023_v44  ;;  %v1030_v57 = vsel %vm1027_vm5, %v1023_v44, %v1024_v46  ;;  %v1029_v58 = vsel %vm1027_vm5, %v1024_v46, %v1025_v47  ;;  %v1028_v60 = vsel %vm1027_vm5, %v1025_v47, %v1026_v40 }
 0x13c   : > { %1068 = vst [vmem:[#allocation4] sm:$0xf] %v1060_v52  ;;  %v1064_v59 = vpack.c.bf16 %v1031_v56, %v1031_v56  ;;  %v1065_v61 = vpack.c.bf16 %v1030_v57, %v1030_v57  ;;  %v1066_v62 = vpack.c.bf16 %v1029_v58, %v1029_v58  ;;  %v1067_v63 = vpack.c.bf16 %v1028_v60, %v1028_v60 }
 0x13d   : > { %1069 = vst [vmem:[#allocation4 + $0x8] sm:$0xf] %v1061_v53 }
 0x13e   : > { %1070 = vst [vmem:[#allocation4 + $0x10] sm:$0xf] %v1062_v54 }
 0x13f   : > { %1071 = vst [vmem:[#allocation4 + $0x18] sm:$0xf] %v1063_v55 }
 0x140   : > { %1072 = vst [vmem:[#allocation4 + $0x20] sm:$0xf] %v1064_v59 }
 0x141   : > { %1073 = vst [vmem:[#allocation4 + $0x28] sm:$0xf] %v1065_v61 }
 0x142   : > { %1074 = vst [vmem:[#allocation4 + $0x30] sm:$0xf] %v1066_v62 }
 0x143   : > { %1075 = vst [vmem:[#allocation4 + $0x38] sm:$0xf] %v1067_v63 }
 0x144 PF: > { %p2338_p2 = scmp.ne.s32.totalorder %s3198_s23, 1 }
 0x146   : > { %1079 = sbr.rel (%p2338_p2) target bundleno = 345 (0x159), region = 104 }
 0x14b   : > { %vm1080_vm6 = vcmp.lt.s32.totalorder %v3563_v2, 2  ;;  %v1088_v0 = vrot.slane %v3599_v23, 6  ;;  %v1095_v3 = vrot.slane %v3634_v35, 6  ;;  %vm1096_vm7 = vcmp.lt.s32.totalorder %v3556_v1, 2 }
 0x14c   : > { %v1089_v4 = vrot.slane %v3601_v24, 6  ;;  %v1090_v5 = vrot.slane %v3603_v25, 6  ;;  %v1091_v6 = vrot.slane %v3617_v29, 6  ;;  %v1092_v7 = vrot.slane %v3619_v30, 6 }
 0x14d   : > { %v1104_v8 = vsel %vm1096_vm7, %v1095_v3, %v1088_v0  ;;  %v1093_v9 = vrot.slane %v3621_v31, 6  ;;  %v1094_v10 = vrot.slane %v3627_v33, 6 }
 0x14e   : > { %v1121_v11 = vsel %vm1080_vm6, 0.0, %v1104_v8  ;;  %v1103_v12 = vsel %vm1096_vm7, %v1088_v0, %v1089_v4  ;;  %v1102_v13 = vsel %vm1096_vm7, %v1089_v4, %v1090_v5  ;;  %v1101_v14 = vsel %vm1096_vm7, %v1090_v5, %v1091_v6 }
 0x14f   : > { %v1129_v15 = vpack.c.bf16 %v1121_v11, %v1121_v11  ;;  %v1130_v16 = vpack.c.bf16 %v1103_v12, %v1103_v12  ;;  %v1131_v17 = vpack.c.bf16 %v1102_v13, %v1102_v13  ;;  %v1132_v18 = vpack.c.bf16 %v1101_v14, %v1101_v14 }
 0x150   : > { %v1100_v19 = vsel %vm1096_vm7, %v1091_v6, %v1092_v7  ;;  %v1099_v20 = vsel %vm1096_vm7, %v1092_v7, %v1093_v9  ;;  %v1098_v21 = vsel %vm1096_vm7, %v1093_v9, %v1094_v10  ;;  %v1097_v38 = vsel %vm1096_vm7, %v1094_v10, %v1095_v3 }
 0x151   : > { %1137 = vst [vmem:[#allocation4] sm:$0xf] %v1129_v15  ;;  %v1133_v22 = vpack.c.bf16 %v1100_v19, %v1100_v19  ;;  %v1134_v39 = vpack.c.bf16 %v1099_v20, %v1099_v20  ;;  %v1135_v40 = vpack.c.bf16 %v1098_v21, %v1098_v21  ;;  %v1136_v41 = vpack.c.bf16 %v1097_v38, %v1097_v38 }
 0x152   : > { %1138 = vst [vmem:[#allocation4 + $0x8] sm:$0xf] %v1130_v16 }
 0x153   : > { %1139 = vst [vmem:[#allocation4 + $0x10] sm:$0xf] %v1131_v17 }
 0x154   : > { %1140 = vst [vmem:[#allocation4 + $0x18] sm:$0xf] %v1132_v18 }
 0x155   : > { %1141 = vst [vmem:[#allocation4 + $0x20] sm:$0xf] %v1133_v22 }
 0x156   : > { %1142 = vst [vmem:[#allocation4 + $0x28] sm:$0xf] %v1134_v39 }
 0x157   : > { %1143 = vst [vmem:[#allocation4 + $0x30] sm:$0xf] %v1135_v40 }
 0x158   : > { %1144 = vst [vmem:[#allocation4 + $0x38] sm:$0xf] %v1136_v41 }
 0x159 PF: > { %p2339_p4 = scmp.ne.s32.totalorder %s3198_s23, 2 }
 0x15b   : > { %1148 = sbr.rel (%p2339_p4) target bundleno = 366 (0x16e), region = 108 }
 0x160   : > { %vm1149_vm8 = vcmp.lt.s32.totalorder %v3563_v2, 4  ;;  %v1157_v42 = vrot.slane %v3599_v23, 4  ;;  %v1164_v43 = vrot.slane %v3634_v35, 4  ;;  %vm1165_vm9 = vcmp.lt.s32.totalorder %v3556_v1, 4 }
 0x161   : > { %v1158_v44 = vrot.slane %v3601_v24, 4  ;;  %v1159_v45 = vrot.slane %v3603_v25, 4  ;;  %v1160_v46 = vrot.slane %v3617_v29, 4  ;;  %v1161_v47 = vrot.slane %v3619_v30, 4 }
 0x162   : > { %v1173_v48 = vsel %vm1165_vm9, %v1164_v43, %v1157_v42  ;;  %v1162_v49 = vrot.slane %v3621_v31, 4  ;;  %v1163_v2 = vrot.slane %v3627_v33, 4 }
 0x163   : > { %v1190_v50 = vsel %vm1149_vm8, 0.0, %v1173_v48  ;;  %v1172_v51 = vsel %vm1165_vm9, %v1157_v42, %v1158_v44  ;;  %v1171_v52 = vsel %vm1165_vm9, %v1158_v44, %v1159_v45  ;;  %v1170_v53 = vsel %vm1165_vm9, %v1159_v45, %v1160_v46 }
 0x164   : > { %v1198_v54 = vpack.c.bf16 %v1190_v50, %v1190_v50  ;;  %v1199_v55 = vpack.c.bf16 %v1172_v51, %v1172_v51  ;;  %v1200_v56 = vpack.c.bf16 %v1171_v52, %v1171_v52  ;;  %v1201_v57 = vpack.c.bf16 %v1170_v53, %v1170_v53 }
 0x165   : > { %v1169_v58 = vsel %vm1165_vm9, %v1160_v46, %v1161_v47  ;;  %v1168_v59 = vsel %vm1165_vm9, %v1161_v47, %v1162_v49  ;;  %v1167_v60 = vsel %vm1165_vm9, %v1162_v49, %v1163_v2  ;;  %v1166_v62 = vsel %vm1165_vm9, %v1163_v2, %v1164_v43 }
 0x166   : > { %1206 = vst [vmem:[#allocation4] sm:$0xf] %v1198_v54  ;;  %v1202_v61 = vpack.c.bf16 %v1169_v58, %v1169_v58  ;;  %v1203_v63 = vpack.c.bf16 %v1168_v59, %v1168_v59  ;;  %v1204_v0 = vpack.c.bf16 %v1167_v60, %v1167_v60  ;;  %v1205_v3 = vpack.c.bf16 %v1166_v62, %v1166_v62 }
 0x167   : > { %1207 = vst [vmem:[#allocation4 + $0x8] sm:$0xf] %v1199_v55 }
 0x168   : > { %1208 = vst [vmem:[#allocation4 + $0x10] sm:$0xf] %v1200_v56 }
 0x169   : > { %1209 = vst [vmem:[#allocation4 + $0x18] sm:$0xf] %v1201_v57 }
 0x16a   : > { %1210 = vst [vmem:[#allocation4 + $0x20] sm:$0xf] %v1202_v61 }
 0x16b   : > { %1211 = vst [vmem:[#allocation4 + $0x28] sm:$0xf] %v1203_v63 }
 0x16c   : > { %1212 = vst [vmem:[#allocation4 + $0x30] sm:$0xf] %v1204_v0 }
 0x16d   : > { %1213 = vst [vmem:[#allocation4 + $0x38] sm:$0xf] %v1205_v3 }
 0x16e PF: > { %p2340_p5 = scmp.ne.s32.totalorder %s3198_s23, 3 }
 0x170   : > { %1217 = sbr.rel (%p2340_p5) target bundleno = 381 (0x17d), region = 112 }
 0x175   : > { %1259 = vst [vmem:[#allocation4 + $0x8] sm:$0xf] %v3607_v26  ;;  %v3225_v1 = vmov 0.0|0.0  }
 0x176   : > { %1258 = vst [vmem:[#allocation4] sm:$0xf] %v3225_v1 }
 0x177   : > { %1260 = vst [vmem:[#allocation4 + $0x10] sm:$0xf] %v3611_v27 }
 0x178   : > { %1261 = vst [vmem:[#allocation4 + $0x18] sm:$0xf] %v3615_v28 }
 0x179   : > { %1262 = vst [vmem:[#allocation4 + $0x20] sm:$0xf] %v3625_v32 }
 0x17a   : > { %1263 = vst [vmem:[#allocation4 + $0x28] sm:$0xf] %v3632_v34 }
 0x17b   : > { %1264 = vst [vmem:[#allocation4 + $0x30] sm:$0xf] %v3639_v36 }
 0x17c   : > { %1265 = vst [vmem:[#allocation4 + $0x38] sm:$0xf] %v3644_v37 }
 0x17d PF: > { %v2581_v26 = vld [vmem:[%s3534_s12 + $0x38] sm:$0xff]  ;;  %v2580_v28 = vld [vmem:[%s3534_s12 + $0x30] sm:$0xff]  ;;  %v2579_v34 = vld [vmem:[%s3534_s12 + $0x28] sm:$0xff]  ;;  %s4005_s8 = sld [smem:[#allocation40_spill]] (!%p2340_p5) }
 0x17e   : > { %v2589_v27 = vld [vmem:[%s3534_s12 + $0x78] sm:$0xff]  ;;  %1446 = vmatpush.bf16.msra.mxu0 %v2581_v26  ;;  %v2588_v32 = vld [vmem:[%s3534_s12 + $0x70] sm:$0xff]  ;;  %2632 = vmatpush.bf16.msra.mxu3 %v2581_v26  ;;  %v2587_v36 = vld [vmem:[%s3534_s12 + $0x68] sm:$0xff]  ;;  %s4006_s7 = sld [smem:[#allocation41_spill]] (!%p2340_p5) }
 0x17f   : > { %1475 = vmatpush.bf16.msra.mxu1 %v2589_v27  ;;  %v2578_v37 = vld [vmem:[%s3534_s12 + $0x20] sm:$0xff]  ;;  %v2577_v5 = vld [vmem:[%s3534_s12 + $0x18] sm:$0xff]  ;;  %v2576_v7 = vld [vmem:[%s3534_s12 + $0x10] sm:$0xff] }
 0x180   : > { %v2586_v4 = vld [vmem:[%s3534_s12 + $0x60] sm:$0xff]  ;;  %v2585_v6 = vld [vmem:[%s3534_s12 + $0x58] sm:$0xff]  ;;  %v2584_v8 = vld [vmem:[%s3534_s12 + $0x50] sm:$0xff] }
 0x181   : > { %v2575_v9 = vld [vmem:[%s3534_s12 + $0x8] sm:$0xff]  ;;  %v2574_v11 = vld [vmem:[%s3534_s12] sm:$0xff]  ;;  %v2351_v17 = vld [vmem:[#allocation4 + $0x10] sm:$0xf] }
 0x182   : > { %1447 = vmatpush.bf16.msra.mxu0 %v2580_v28  ;;  %2633 = vmatpush.bf16.msra.mxu3 %v2580_v28  ;;  %v2583_v10 = vld [vmem:[%s3534_s12 + $0x48] sm:$0xff]  ;;  %v2582_v12 = vld [vmem:[%s3534_s12 + $0x40] sm:$0xff]  ;;  %v2569_v18 = vld [vmem:[#allocation4 + $0x14] sm:$0xf0] }
 0x183   : > { %1476 = vmatpush.bf16.msra.mxu1 %v2588_v32  ;;  %v2343_v13 = vld [vmem:[#allocation4] sm:$0xf]  ;;  %v2567_v14 = vld [vmem:[#allocation4 + $0x4] sm:$0xf0]  ;;  %v2566_v15 = vld [vmem:[#allocation4 + $0x4] sm:$0xf]  ;;  %v2352_v21 = vor.u32 %v2569_v18, %v2351_v17 }
 0x184   : > { %v2345_v16 = vld [vmem:[#allocation4 + $0x8] sm:$0xf0]  ;;  %v2344_v19 = vor.u32 %v2567_v14, %v2343_v13  ;;  %v2568_v22 = vld [vmem:[#allocation4 + $0x14] sm:$0xf]  ;;  %v2353_v38 = vld [vmem:[#allocation4 + $0x18] sm:$0xf0] }
 0x185   : > { %v2348_v20 = vor.u32 %v2566_v15, %v2345_v16  ;;  %v2359_v39 = vld [vmem:[#allocation4 + $0x20] sm:$0xf]  ;;  %v2571_v40 = vld [vmem:[#allocation4 + $0x24] sm:$0xf0]  ;;  %v2356_v41 = vor.u32 %v2568_v22, %v2353_v38  ;;  %v2570_v43 = vld [vmem:[#allocation4 + $0x24] sm:$0xf] }
 0x186   : > { %1448 = vmatpush.bf16.msra.mxu0 %v2579_v34  ;;  %2634 = vmatpush.bf16.msra.mxu3 %v2579_v34  ;;  %v2360_v42 = vor.u32 %v2571_v40, %v2359_v39  ;;  %v2361_v44 = vld [vmem:[#allocation4 + $0x28] sm:$0xf0]  ;;  %v2367_v45 = vld [vmem:[#allocation4 + $0x30] sm:$0xf]  ;;  %v2573_v46 = vld [vmem:[#allocation4 + $0x34] sm:$0xf0] }
 0x187   : > { %1477 = vmatpush.bf16.msra.mxu1 %v2587_v36  ;;  %v2364_v47 = vor.u32 %v2570_v43, %v2361_v44  ;;  %v2368_v48 = vor.u32 %v2573_v46, %v2367_v45  ;;  %v2572_v49 = vld [vmem:[#allocation4 + $0x34] sm:$0xf]  ;;  %v2369_v2 = vld [vmem:[#allocation4 + $0x38] sm:$0xf0]  ;;  %v2595_v53 = vld [vmem:[%s3542_s26 + $0x28] sm:$0xff] }
 0x188   : > { %v2372_v50 = vor.u32 %v2572_v49, %v2369_v2  ;;  %v2597_v51 = vld [vmem:[%s3542_s26 + $0x38] sm:$0xff]  ;;  %v2596_v52 = vld [vmem:[%s3542_s26 + $0x30] sm:$0xff]  ;;  %v2594_v54 = vld [vmem:[%s3542_s26 + $0x20] sm:$0xff] }
 0x189   : > { %1744 = vmatpush.bf16.msra.mxu2 %v2597_v51  ;;  %v2593_v55 = vld [vmem:[%s3542_s26 + $0x18] sm:$0xff]  ;;  %v2592_v59 = vld [vmem:[%s3542_s26 + $0x10] sm:$0xff]  ;;  %v2591_v62 = vld [vmem:[%s3542_s26 + $0x8] sm:$0xff] }
 0x18a   : > { %1449 = vmatpush.bf16.msra.mxu0 %v2578_v37  ;;  %2635 = vmatpush.bf16.msra.mxu3 %v2578_v37  ;;  %v3767_v56 = vld [vmem:[%s513_s10] ss:$0 sm:$0xff]  ;;  %v2590_v26 = vld [vmem:[%s3542_s26] sm:$0xff] }
 0x18b   : > { %1478 = vmatpush.bf16.msra.mxu1 %v2586_v4 }
 0x18d   : > { %1745 = vmatpush.bf16.msra.mxu2 %v2596_v52 }
 0x18e   : > { %1450 = vmatpush.bf16.msra.mxu0 %v2577_v5  ;;  %2636 = vmatpush.bf16.msra.mxu3 %v2577_v5 }
 0x18f   : > { %1479 = vmatpush.bf16.msra.mxu1 %v2585_v6 }
 0x191   : > { %1746 = vmatpush.bf16.msra.mxu2 %v2595_v53 }
 0x192   : > { %1451 = vmatpush.bf16.msra.mxu0 %v2576_v7  ;;  %2637 = vmatpush.bf16.msra.mxu3 %v2576_v7 }
 0x193   : > { %1480 = vmatpush.bf16.msra.mxu1 %v2584_v8 }
 0x195   : > { %1747 = vmatpush.bf16.msra.mxu2 %v2594_v54 }
 0x196   : > { %1452 = vmatpush.bf16.msra.mxu0 %v2575_v9  ;;  %2638 = vmatpush.bf16.msra.mxu3 %v2575_v9 }
 0x197   : > { %1481 = vmatpush.bf16.msra.mxu1 %v2583_v10 }
 0x199   : > { %1748 = vmatpush.bf16.msra.mxu2 %v2593_v55 }
 0x19a   : > { %1453 = vmatpush.bf16.msra.mxu0 %v2574_v11  ;;  %2639 = vmatpush.bf16.msra.mxu3 %v2574_v11 }
 0x19b   : > { %1482 = vmatpush.bf16.msra.mxu1 %v2582_v12 }
 0x19d   : > { %1454 = vmatmul.bf16.vlgmr.msra.gmra.mxu0 %v2344_v19  ;;  %1459 = vmatmul.bf16.vlgmr.msra.gmra.mxu3 %v2352_v21 }
 0x19e   : > { %1483 = vmatmul.bf16.vlgmr.msra.gmra.mxu1 %v2348_v20  ;;  %1749 = vmatpush.bf16.msra.mxu2 %v2592_v59 }
 0x1a2   : > { %1750 = vmatpush.bf16.msra.mxu2 %v2591_v62 }
 0x1a6   : > { %1751 = vmatpush.bf16.msra.mxu2 %v2590_v26 }
 0x1ad   : > { %1464 = vmatmul.bf16.gmra.mxu3 %v2360_v42 }
 0x1ae   : > { %1488 = vmatmul.bf16.gmra.mxu1 %v2356_v41 }
 0x1bd   : > { %1469 = vmatmul.bf16.gmra.mxu3 %v2368_v48 }
 0x1be   : > { %1493 = vmatmul.bf16.gmra.mxu1 %v2364_v47 }
 0x1ce   : > { %1498 = vmatmul.bf16.gmra.mxu1 %v2372_v50 }
 0x21a   : > { %v1455_v57 = vpop.f32.mrf.mxu0 }
 0x21b   : > { %v1484_v58 = vpop.f32.mrf.mxu1  ;;  %v1456_v60 = vadd.f32 %v3767_v56, %v1455_v57 }
 0x21d   : > { %v1485_v61 = vadd.f32 %v1484_v58, %v1456_v60 }
 0x21f   : > { %v2437_v63 = vmul.f32 -1.442695, %v1485_v61 }
 0x220   : > { %v1460_v0 = vpop.f32.mrf.mxu3 }
 0x221   : > { %2816 = vpow2.f32 %v2437_v63  ;;  %v1461_v34 = vadd.f32 %v3767_v56, %v1460_v0 }
 0x222   : > { %v1457_v3 = vpop.f32.mrf.mxu0 }
 0x223   : > { %v1486_v1 = vpop.f32.mrf.mxu1  ;;  %v1458_v27 = vadd.f32 %v3767_v56, %v1457_v3 }
 0x225   : > { %v1487_v28 = vadd.f32 %v1486_v1, %v1458_v27 }
 0x227   : > { %v2817_v32 = vpop.eup %2816  ;;  %v2438_v36 = vmul.f32 -1.442695, %v1487_v28 }
 0x228   : > { %v1536_v37 = vadd.f32 1.0, %v2817_v32  ;;  %v1462_v4 = vpop.f32.mrf.mxu3 }
 0x229   : > { %2818 = vpow2.f32 %v2438_v36  ;;  %v1463_v11 = vadd.f32 %v3767_v56, %v1462_v4 }
 0x22a   : > { %2820 = vrcp.f32 %v1536_v37  ;;  %v1553_v42 = vand.u32 2147483647, %v1536_v37  ;;  %v1555_v43 = vand.u32 2147483648, %v1536_v37  ;;  %vm1549_vm11 = vweird.f32 %v1536_v37 }
 0x22b   : > { %v1489_v5 = vpop.f32.mrf.mxu1 }
 0x22c   : > { %v3775_v6 = vadd.f32 %v1489_v5, %v1461_v34  ;;  %vm1554_vm14 = vcmp.eq.f32.partialorder %v1553_v42, 8.507059e+37  ;;  %v1556_v54 = vor.u32 1.1754944e-38, %v1555_v43 }
 0x22e   : > { %v2439_v7 = vmul.f32 -1.442695, %v3775_v6 }
 0x22f   : > { %v2819_v8 = vpop.eup %2818 }
 0x230   : > { %2822 = vpow2.f32 %v2439_v7  ;;  %v2821_v9 = vpop.eup %2820  ;;  %v1537_v10 = vadd.f32 1.0, %v2819_v8  ;;  %v1465_v12 = vpop.f32.mrf.mxu3 }
 0x231   : > { %v1545_v13 = vmul.f32 %v2821_v9, %v1536_v37  ;;  %v1466_v21 = vadd.f32 %v3767_v56, %v1465_v12  ;;  %vm1550_vm10 = vweird.f32 %v2821_v9 }
 0x232   : > { %2824 = vrcp.f32 %v1537_v10  ;;  %vm3788_vm12 = vmor %vm1549_vm11, %vm1550_vm10  ;;  %v1568_v47 = vand.u32 2147483647, %v1537_v10  ;;  %v1570_v48 = vand.u32 2147483648, %v1537_v10  ;;  %vm1564_vm15 = vweird.f32 %v1537_v10 }
 0x233   : > { %v1491_v14 = vpop.f32.mrf.mxu1  ;;  %v1546_v16 = vsub.f32 1.0, %v1545_v13 }
 0x234   : > { %v3779_v15 = vadd.f32 %v1491_v14, %v1463_v11  ;;  %v1571_v59 = vor.u32 1.1754944e-38, %v1570_v48  ;;  %vm1569_vm1 = vcmp.eq.f32.partialorder %v1568_v47, 8.507059e+37 }
 0x235   : > { %v1547_v19 = vmul.f32 %v2821_v9, %v1546_v16 }
 0x236   : > { %v2823_v17 = vpop.eup %2822  ;;  %v2440_v18 = vmul.f32 -1.442695, %v3779_v15 }
 0x237   : > { %v3782_v20 = vadd.f32 1.0, %v2823_v17  ;;  %v1548_v38 = vadd.f32 %v2821_v9, %v1547_v19 }
 0x238   : > { %2826 = vpow2.f32 %v2440_v18  ;;  %v2825_v22 = vpop.eup %2824  ;;  %v1467_v40 = vpop.f32.mrf.mxu3 }
 0x239   : > { %2828 = vrcp.f32 %v3782_v20  ;;  %v1560_v39 = vmul.f32 %v2825_v22, %v1537_v10  ;;  %v1552_v50 = vsel %vm3788_vm12, %v2821_v9, %v1548_v38  ;;  %vm1565_vm13 = vweird.f32 %v2825_v22 }
 0x23a   : > { %2830 = vtanh.f32 %v1485_v61  ;;  %v1557_v58 = vsel %vm1554_vm14, %v1556_v54, %v1552_v50  ;;  %vm1566_vm0 = vmor %vm1564_vm15, %vm1565_vm13  ;;  %v1468_v61 = vadd.f32 %v3767_v56, %v1467_v40  ;;  %vm1579_vm3 = vweird.f32 %v3782_v20 }
 0x23b   : > { %v1494_v41 = vpop.f32.mrf.mxu1  ;;  %v1561_v45 = vsub.f32 1.0, %v1560_v39  ;;  %2832 = vtanh.f32 %v1487_v28  ;;  %v1583_v13 = vand.u32 2147483647, %v3782_v20  ;;  %v1585_v14 = vand.u32 2147483648, %v3782_v20 }
 0x23c   : > { %v3786_v44 = vadd.f32 %v1494_v41, %v1466_v21 }
 0x23d   : > { %v1562_v51 = vmul.f32 %v2825_v22, %v1561_v45  ;;  %vm1584_vm7 = vcmp.eq.f32.partialorder %v1583_v13, 8.507059e+37  ;;  %v1586_v42 = vor.u32 1.1754944e-38, %v1585_v14 }
 0x23e   : > { %v2827_v49 = vpop.eup %2826  ;;  %v2441_v2 = vmul.f32 -1.442695, %v3786_v44 }
 0x23f   : > { %v3795_v52 = vpop.eup %2828  ;;  %v3797_v53 = vadd.f32 1.0, %v2827_v49  ;;  %v1563_v55 = vadd.f32 %v2825_v22, %v1562_v51 }
 0x240   : > { %2834 = vpow2.f32 %v2441_v2  ;;  %v1575_v57 = vmul.f32 %v3795_v52, %v3782_v20  ;;  %v2831_v60 = vpop.eup %2830  ;;  %v1470_v32 = vpop.f32.mrf.mxu3  ;;  %vm1580_vm2 = vweird.f32 %v3795_v52 }
 0x241   : > { %2836 = vrcp.f32 %v3797_v53  ;;  %v1567_v62 = vsel %vm1566_vm0, %v2825_v22, %v1563_v55  ;;  %v2833_v0 = vpop.eup %2832  ;;  %v1664_v27 = vmul.f32 %v2831_v60, %v1557_v58  ;;  %v1471_v8 = vadd.f32 %v3767_v56, %v1470_v32  ;;  %vm3823_vm5 = vmor %vm1579_vm3, %vm1580_vm2 }
 0x242   : > { %v1576_v63 = vsub.f32 1.0, %v1575_v57  ;;  %v1572_v1 = vsel %vm1569_vm1, %v1571_v59, %v1567_v62  ;;  %v1600_v16 = vand.u32 2147483648, %v3797_v53  ;;  %vm1594_vm6 = vweird.f32 %v3797_v53 }
 0x243   : > { %v1496_v3 = vpop.f32.mrf.mxu1  ;;  %v1665_v28 = vmul.f32 %v2833_v0, %v1572_v1 }
 0x244   : > { %v3803_v26 = vadd.f32 %v1496_v3, %v1468_v61  ;;  %v1577_v4 = vmul.f32 %v3795_v52, %v1576_v63 }
 0x245   : > { %v1672_v37 = vpack.c.bf16 %v1665_v28, %v1664_v27 }
 0x246   : > { %v2835_v34 = vpop.eup %2834  ;;  %v2442_v36 = vmul.f32 -1.442695, %v3803_v26  ;;  %v1578_v10 = vadd.f32 %v3795_v52, %v1577_v4 }
 0x247   : > { %v2837_v5 = vpop.eup %2836  ;;  %v3807_v7 = vadd.f32 1.0, %v2835_v34  ;;  %1752 = vmatmul.bf16.vlgmr.msra.gmra.mxu2 %v1672_v37 }
 0x248   : > { %2838 = vpow2.f32 %v2442_v36  ;;  %v1590_v9 = vmul.f32 %v2837_v5, %v3797_v53  ;;  %vm1595_vm4 = vweird.f32 %v2837_v5  ;;  %v1582_v20 = vsel %vm3823_vm5, %v3795_v52, %v1578_v10  ;;  %v1472_v41 = vpop.f32.mrf.mxu3 }
 0x249   : > { %2840 = vrcp.f32 %v3807_v7  ;;  %vm1596_vm8 = vmor %vm1594_vm6, %vm1595_vm4  ;;  %v1587_v47 = vsel %vm1584_vm7, %v1586_v42, %v1582_v20  ;;  %v1473_v49 = vadd.f32 %v3767_v56, %v1472_v41  ;;  %vm1609_vm11 = vweird.f32 %v3807_v7 }
 0x24a   : > { %2842 = vtanh.f32 %v3779_v15  ;;  %v1591_v11 = vsub.f32 1.0, %v1590_v9  ;;  %v1598_v15 = vand.u32 2147483647, %v3797_v53  ;;  %v1615_v0 = vand.u32 2147483648, %v3807_v7 }
 0x24b   : > { %v1499_v12 = vpop.f32.mrf.mxu1  ;;  %2844 = vtanh.f32 %v3775_v6  ;;  %v1601_v6 = vor.u32 1.1754944e-38, %v1600_v16  ;;  %v1613_v1 = vand.u32 2147483647, %v3807_v7 }
 0x24c   : > { %v3819_v17 = vadd.f32 %v1499_v12, %v1471_v8  ;;  %v1592_v18 = vmul.f32 %v2837_v5, %v1591_v11  ;;  %vm1599_vm9 = vcmp.eq.f32.partialorder %v1598_v15, 8.507059e+37 }
 0x24d   : > { %vm1614_vm0 = vcmp.eq.f32.partialorder %v1613_v1, 8.507059e+37 }
 0x24e   : > { %v2839_v21 = vpop.eup %2838  ;;  %v2443_v22 = vmul.f32 -1.442695, %v3819_v17  ;;  %v1593_v38 = vadd.f32 %v2837_v5, %v1592_v18 }
 0x24f   : > { %v2841_v39 = vpop.eup %2840  ;;  %v1541_v40 = vadd.f32 1.0, %v2839_v21 }
 0x250   : > { %v2843_v43 = vpop.eup %2842  ;;  %2846 = vpow2.f32 %v2443_v22  ;;  %v1597_v45 = vsel %vm1596_vm8, %v2837_v5, %v1593_v38  ;;  %v1605_v46 = vmul.f32 %v2841_v39, %v3807_v7  ;;  %vm1610_vm10 = vweird.f32 %v2841_v39 }
 0x251   : > { %2848 = vrcp.f32 %v1541_v40  ;;  %v1602_v48 = vsel %vm1599_vm9, %v1601_v6, %v1597_v45  ;;  %v2845_v51 = vpop.eup %2844  ;;  %v1630_v3 = vand.u32 2147483648, %v1541_v40  ;;  %v1628_v28 = vand.u32 2147483647, %v1541_v40  ;;  %vm3842_vm13 = vmor %vm1609_vm11, %vm1610_vm10 }
 0x252   : > { %v1667_v2 = vmul.f32 %v2843_v43, %v1602_v48  ;;  %v1606_v50 = vsub.f32 1.0, %v1605_v46  ;;  %v1666_v54 = vmul.f32 %v2845_v51, %v1587_v47  ;;  %vm1624_vm14 = vweird.f32 %v1541_v40 }
 0x253   : > { %v1501_v52 = vpop.f32.mrf.mxu1  ;;  %v1616_v5 = vor.u32 1.1754944e-38, %v1615_v0  ;;  %v1631_v7 = vor.u32 1.1754944e-38, %v1630_v3  ;;  %vm1629_vm1 = vcmp.eq.f32.partialorder %v1628_v28, 8.507059e+37  ;;  %v1775_v3 = vld [vmem:[#allocation3 + $0x10] sm:$0xff] }
 0x254   : > { %v1502_v53 = vadd.f32 %v1501_v52, %v1473_v49  ;;  %v1673_v58 = vpack.c.bf16 %v1667_v2, %v1666_v54  ;;  %v1607_v59 = vmul.f32 %v2841_v39, %v1606_v50 }
 0x256   : > { %v2847_v55 = vpop.eup %2846  ;;  %v2444_v57 = vmul.f32 -1.442695, %v1502_v53  ;;  %v1608_v63 = vadd.f32 %v2841_v39, %v1607_v59 }
 0x257   : > { %v2849_v60 = vpop.eup %2848  ;;  %v3834_v61 = vadd.f32 1.0, %v2847_v55  ;;  %1757 = vmatmul.bf16.gmra.mxu2 %v1673_v58  ;;  %v1773_v55 = vld [vmem:[#allocation3] sm:$0xff] }
 0x258   : > { %2850 = vpow2.f32 %v2444_v57  ;;  %v1620_v62 = vmul.f32 %v2849_v60, %v1541_v40  ;;  %vm1625_vm12 = vweird.f32 %v2849_v60 }
 0x259   : > { %2852 = vrcp.f32 %v3834_v61  ;;  %vm1626_vm15 = vmor %vm1624_vm14, %vm1625_vm12  ;;  %vm1639_vm3 = vweird.f32 %v3834_v61  ;;  %v1645_v38 = vand.u32 2147483648, %v3834_v61  ;;  %v1643_v40 = vand.u32 2147483647, %v3834_v61 }
 0x25a   : > { %v1621_v56 = vsub.f32 1.0, %v1620_v62  ;;  %2854 = vtanh.f32 %v3803_v26  ;;  %v1612_v26 = vsel %vm3842_vm13, %v2841_v39, %v1608_v63 }
 0x25b   : > { %2856 = vtanh.f32 %v3786_v44  ;;  %v1617_v10 = vsel %vm1614_vm0, %v1616_v5, %v1612_v26  ;;  %v1646_v45 = vor.u32 1.1754944e-38, %v1645_v38  ;;  %vm1644_vm8 = vcmp.eq.f32.partialorder %v1643_v40, 8.507059e+37 }
 0x25c   : > { %v1622_v27 = vmul.f32 %v2849_v60, %v1621_v56 }
 0x25e   : > { %v2851_v34 = vpop.eup %2850  ;;  %v1623_v36 = vadd.f32 %v2849_v60, %v1622_v27 }
 0x25f   : > { %v2853_v37 = vpop.eup %2852  ;;  %v1543_v4 = vadd.f32 1.0, %v2851_v34 }
 0x260   : > { %v1627_v8 = vsel %vm1626_vm15, %v2849_v60, %v1623_v36  ;;  %v1635_v44 = vmul.f32 %v2853_v37, %v3834_v61  ;;  %v2855_v9 = vpop.eup %2854  ;;  %vm1640_vm2 = vweird.f32 %v2853_v37  ;;  %v1774_v61 = vld [vmem:[#allocation3 + $0x18] sm:$0xff] }
 0x261   : > { %2858 = vrcp.f32 %v1543_v4  ;;  %v1632_v11 = vsel %vm1629_vm1, %v1631_v7, %v1627_v8  ;;  %v2857_v14 = vpop.eup %2856  ;;  %v1660_v39 = vand.u32 2147483648, %v1543_v4  ;;  %v1658_v42 = vand.u32 2147483647, %v1543_v4  ;;  %vm1641_vm5 = vmor %vm1639_vm3, %vm1640_vm2 }
 0x262   : > { %v1669_v12 = vmul.f32 %v2855_v9, %v1632_v11  ;;  %v1636_v13 = vsub.f32 1.0, %v1635_v44  ;;  %v1668_v16 = vmul.f32 %v2857_v14, %v1617_v10  ;;  %2860 = vtanh.f32 %v1502_v53 }
 0x263   : > { %2862 = vtanh.f32 %v3819_v17  ;;  %vm1654_vm6 = vweird.f32 %v1543_v4  ;;  %v1661_v46 = vor.u32 1.1754944e-38, %v1660_v39  ;;  %vm1659_vm9 = vcmp.eq.f32.partialorder %v1658_v42, 8.507059e+37  ;;  %v2815_v17 = vld [vmem:[%s593_s29] ss:$0 sm:$0xff] }
 0x264   : > { %v1674_v18 = vpack.c.bf16 %v1669_v12, %v1668_v16  ;;  %v1637_v15 = vmul.f32 %v2853_v37, %v1636_v13 }
 0x266   : > { %v1638_v22 = vadd.f32 %v2853_v37, %v1637_v15 }
 0x267   : > { %v2859_v19 = vpop.eup %2858  ;;  %1762 = vmatmul.bf16.gmra.mxu2 %v1674_v18 }
 0x268   : > { %v1650_v21 = vmul.f32 %v2859_v19, %v1543_v4  ;;  %vm1655_vm4 = vweird.f32 %v2859_v19  ;;  %v1642_v6 = vsel %vm1641_vm5, %v2853_v37, %v1638_v22  ;;  %v2861_v48 = vpop.eup %2860 }
 0x269   : > { %vm1656_vm7 = vmor %vm1654_vm6, %vm1655_vm4  ;;  %v1647_v49 = vsel %vm1644_vm8, %v1646_v45, %v1642_v6  ;;  %v2863_v51 = vpop.eup %2862 }
 0x26a   : > { %v1651_v20 = vsub.f32 1.0, %v1650_v21  ;;  %v1670_v52 = vmul.f32 %v2863_v51, %v1647_v49 }
 0x26c   : > { %v1652_v41 = vmul.f32 %v2859_v19, %v1651_v20 }
 0x26e   : > { %v1653_v43 = vadd.f32 %v2859_v19, %v1652_v41 }
 0x270   : > { %v1657_v47 = vsel %vm1656_vm7, %v2859_v19, %v1653_v43 }
 0x271   : > { %v1662_v2 = vsel %vm1659_vm9, %v1661_v46, %v1657_v47 }
 0x272   : > { %v1671_v50 = vmul.f32 %v2861_v48, %v1662_v2 }
 0x274   : > { %v1675_v53 = vpack.c.bf16 %v1671_v50, %v1670_v52 }
 0x277   : > { %1767 = vmatmul.bf16.gmra.mxu2 %v1675_v53 }
 0x2ca   : > { %v1753_v54 = vpop.f32.mrf.mxu2 }
 0x2cb   : > { %v1754_v57 = vadd.f32 %v2815_v17, %v1753_v54 }
 0x2cd   : > { %v1781_v58 = vadd.f32 %v1773_v55, %v1754_v57  ;;  %v1797_v59 = vadd.f32 %v1754_v57, %v3599_v23  ;;  %v1776_v23 = vld [vmem:[#allocation3 + $0x20] sm:$0xff] }
 0x2cf   : > { %1789 = vst [vmem:[#allocation3] sm:$0xff] %v1781_v58 }
 0x2d0   : > { %1805 = vst [vmem:[#allocation2 + $0x30] sm:$0xff] %v1797_v59 }
 0x2d2   : > { %v1755_v60 = vpop.f32.mrf.mxu2 }
 0x2d3   : > { %v1756_v62 = vadd.f32 %v2815_v17, %v1755_v60 }
 0x2d5   : > { %v1782_v63 = vadd.f32 %v1774_v61, %v1756_v62  ;;  %v1798_v56 = vadd.f32 %v1756_v62, %v3601_v24  ;;  %v1777_v24 = vld [vmem:[#allocation3 + $0x28] sm:$0xff] }
 0x2d7   : > { %1790 = vst [vmem:[#allocation3 + $0x18] sm:$0xff] %v1782_v63 }
 0x2d8   : > { %1806 = vst [vmem:[#allocation2] sm:$0xff] %v1798_v56 }
 0x2da   : > { %v1758_v0 = vpop.f32.mrf.mxu2 }
 0x2db   : > { %v1759_v1 = vadd.f32 %v2815_v17, %v1758_v0 }
 0x2dd   : > { %v1783_v27 = vadd.f32 %v1775_v3, %v1759_v1  ;;  %v1799_v28 = vadd.f32 %v1759_v1, %v3603_v25  ;;  %v1778_v25 = vld [vmem:[#allocation3 + $0x8] sm:$0xff] }
 0x2df   : > { %1791 = vst [vmem:[#allocation3 + $0x10] sm:$0xff] %v1783_v27 }
 0x2e0   : > { %1807 = vst [vmem:[#allocation2 + $0x18] sm:$0xff] %v1799_v28 }
 0x2e2   : > { %v1760_v32 = vpop.f32.mrf.mxu2 }
 0x2e3   : > { %v1761_v34 = vadd.f32 %v2815_v17, %v1760_v32 }
 0x2e5   : > { %v1784_v26 = vadd.f32 %v1776_v23, %v1761_v34  ;;  %v1800_v36 = vadd.f32 %v1761_v34, %v3617_v29  ;;  %v1779_v29 = vld [vmem:[#allocation3 + $0x30] sm:$0xff] }
 0x2e7   : > { %1792 = vst [vmem:[#allocation3 + $0x20] sm:$0xff] %v1784_v26 }
 0x2e8   : > { %1808 = vst [vmem:[#allocation2 + $0x10] sm:$0xff] %v1800_v36 }
 0x2ea   : > { %v1763_v37 = vpop.f32.mrf.mxu2 }
 0x2eb   : > { %v1764_v4 = vadd.f32 %v2815_v17, %v1763_v37 }
 0x2ed   : > { %v1785_v5 = vadd.f32 %v1777_v24, %v1764_v4  ;;  %v1801_v7 = vadd.f32 %v1764_v4, %v3619_v30  ;;  %v1780_v30 = vld [vmem:[#allocation3 + $0x38] sm:$0xff] }
 0x2ef   : > { %1793 = vst [vmem:[#allocation3 + $0x28] sm:$0xff] %v1785_v5 }
 0x2f0   : > { %1809 = vst [vmem:[#allocation2 + $0x8] sm:$0xff] %v1801_v7 }
 0x2f2   : > { %v1765_v8 = vpop.f32.mrf.mxu2 }
 0x2f3   : > { %v1766_v44 = vadd.f32 %v2815_v17, %v1765_v8 }
 0x2f5   : > { %v1786_v9 = vadd.f32 %v1778_v25, %v1766_v44  ;;  %v1802_v10 = vadd.f32 %v1766_v44, %v3621_v31 }
 0x2f7   : > { %1794 = vst [vmem:[#allocation3 + $0x8] sm:$0xff] %v1786_v9 }
 0x2f8   : > { %1810 = vst [vmem:[#allocation2 + $0x20] sm:$0xff] %v1802_v10 }
 0x2fa   : > { %v1768_v11 = vpop.f32.mrf.mxu2 }
 0x2fb   : > { %v1769_v12 = vadd.f32 %v2815_v17, %v1768_v11 }
 0x2fd   : > { %v1787_v13 = vadd.f32 %v1779_v29, %v1769_v12  ;;  %v1803_v14 = vadd.f32 %v1769_v12, %v3627_v33 }
 0x2ff   : > { %1795 = vst [vmem:[#allocation3 + $0x30] sm:$0xff] %v1787_v13 }
 0x300   : > { %1811 = vst [vmem:[#allocation2 + $0x28] sm:$0xff] %v1803_v14 }
 0x302   : > { %v1770_v16 = vpop.f32.mrf.mxu2 }
 0x303   : > { %v1771_v18 = vadd.f32 %v2815_v17, %v1770_v16 }
 0x304   : > { %1815 = sbr.rel (%p2340_p5) target bundleno = 1114 (0x45a), region = 116 }
 0x305   : > { %v1788_v15 = vadd.f32 %v1780_v30, %v1771_v18  ;;  %v1804_v19 = vadd.f32 %v1771_v18, %v3634_v35 }
 0x307   : > { %1796 = vst [vmem:[#allocation3 + $0x38] sm:$0xff] %v1788_v15 }
 0x308   : > { %1812 = vst [vmem:[#allocation2 + $0x38] sm:$0xff] %v1804_v19 }
 0x309   : > { %v2605_v31 = vld [vmem:[#allocation13 + $0x38] sm:$0xff]  ;;  %v2604_v21 = vld [vmem:[#allocation13 + $0x30] sm:$0xff]  ;;  %v2603_v33 = vld [vmem:[#allocation13 + $0x28] sm:$0xff] }
 0x30a   : > { %1904 = vmatpush.bf16.msra.mxu0 %v2605_v31  ;;  %2640 = vmatpush.bf16.msra.mxu2 %v2605_v31  ;;  %v2602_v22 = vld [vmem:[#allocation13 + $0x20] sm:$0xff]  ;;  %v2601_v20 = vld [vmem:[#allocation13 + $0x18] sm:$0xff]  ;;  %v2600_v35 = vld [vmem:[#allocation13 + $0x10] sm:$0xff] }
 0x30b   : > { %v2613_v38 = vld [vmem:[#allocation14 + $0x38] sm:$0xff]  ;;  %v2612_v39 = vld [vmem:[#allocation14 + $0x30] sm:$0xff]  ;;  %v2599_v40 = vld [vmem:[#allocation13 + $0x8] sm:$0xff] }
 0x30c   : > { %2013 = vmatpush.bf16.msra.mxu1 %v2613_v38  ;;  %2648 = vmatpush.bf16.msra.mxu3 %v2613_v38  ;;  %v1816_v41 = vld [vmem:[#allocation3] sm:$0xff]  ;;  %v1817_v42 = vld [vmem:[#allocation3 + $0x18] sm:$0xff]  ;;  %v1820_v6 = vld [vmem:[#allocation3 + $0x28] sm:$0xff] }
 0x30d   : > { %v1821_v43 = vld [vmem:[#allocation3 + $0x8] sm:$0xff]  ;;  %v1824_v46 = vmax.f32 %v1816_v41, 0.0  ;;  %v1825_v47 = vmax.f32 %v1817_v42, 0.0  ;;  %v1828_v48 = vmax.f32 %v1820_v6, 0.0  ;;  %v1818_v53 = vld [vmem:[#allocation3 + $0x10] sm:$0xff]  ;;  %v1819_v17 = vld [vmem:[#allocation3 + $0x20] sm:$0xff] }
 0x30e   : > { %1905 = vmatpush.bf16.msra.mxu0 %v2604_v21  ;;  %2641 = vmatpush.bf16.msra.mxu2 %v2604_v21  ;;  %v2611_v45 = vld [vmem:[#allocation14 + $0x28] sm:$0xff]  ;;  %v1829_v49 = vmax.f32 %v1821_v43, 0.0  ;;  %v2598_v2 = vld [vmem:[#allocation13] sm:$0xff]  ;;  %v1823_v55 = vld [vmem:[#allocation3 + $0x38] sm:$0xff]  ;;  %v1826_v57 = vmax.f32 %v1818_v53, 0.0  ;;  %v1827_v58 = vmax.f32 %v1819_v17, 0.0 }
 0x30f   : > { %v2610_v50 = vld [vmem:[#allocation14 + $0x20] sm:$0xff]  ;;  %v1832_v51 = vpack.c.bf16 %v1825_v47, %v1824_v46  ;;  %v1822_v54 = vld [vmem:[#allocation3 + $0x30] sm:$0xff]  ;;  %v1831_v60 = vmax.f32 %v1823_v55, 0.0  ;;  %v2609_v63 = vld [vmem:[#allocation14 + $0x18] sm:$0xff] }
 0x310   : > { %2014 = vmatpush.bf16.msra.mxu1 %v2612_v39  ;;  %2649 = vmatpush.bf16.msra.mxu3 %v2612_v39  ;;  %v1834_v52 = vpack.c.bf16 %v1829_v49, %v1828_v48  ;;  %v1830_v59 = vmax.f32 %v1822_v54, 0.0  ;;  %v1833_v61 = vpack.c.bf16 %v1827_v58, %v1826_v57  ;;  %v2608_v56 = vld [vmem:[#allocation14 + $0x10] sm:$0xff]  ;;  %v2607_v0 = vld [vmem:[#allocation14 + $0x8] sm:$0xff]  ;;  %v2606_v3 = vld [vmem:[#allocation14] sm:$0xff] }
 0x311   : > { %v2864_v27 = vld [vmem:[%s4005_s8] ss:$0 sm:$0xff] }
 0x312   : > { %1906 = vmatpush.bf16.msra.mxu0 %v2603_v33  ;;  %2642 = vmatpush.bf16.msra.mxu2 %v2603_v33  ;;  %v1835_v62 = vpack.c.bf16 %v1831_v60, %v1830_v59  ;;  %v2865_v21 = vld [vmem:[%s4006_s7] ss:$0 sm:$0xff] }
 0x314   : > { %2015 = vmatpush.bf16.msra.mxu1 %v2611_v45  ;;  %2650 = vmatpush.bf16.msra.mxu3 %v2611_v45 }
 0x316   : > { %1907 = vmatpush.bf16.msra.mxu0 %v2602_v22  ;;  %2643 = vmatpush.bf16.msra.mxu2 %v2602_v22 }
 0x318   : > { %2016 = vmatpush.bf16.msra.mxu1 %v2610_v50  ;;  %2651 = vmatpush.bf16.msra.mxu3 %v2610_v50 }
 0x31a   : > { %1908 = vmatpush.bf16.msra.mxu0 %v2601_v20  ;;  %2644 = vmatpush.bf16.msra.mxu2 %v2601_v20 }
 0x31c   : > { %2017 = vmatpush.bf16.msra.mxu1 %v2609_v63  ;;  %2652 = vmatpush.bf16.msra.mxu3 %v2609_v63 }
 0x31e   : > { %1909 = vmatpush.bf16.msra.mxu0 %v2600_v35  ;;  %2645 = vmatpush.bf16.msra.mxu2 %v2600_v35 }
 0x320   : > { %2018 = vmatpush.bf16.msra.mxu1 %v2608_v56  ;;  %2653 = vmatpush.bf16.msra.mxu3 %v2608_v56 }
 0x322   : > { %1910 = vmatpush.bf16.msra.mxu0 %v2599_v40  ;;  %2646 = vmatpush.bf16.msra.mxu2 %v2599_v40 }
 0x324   : > { %2019 = vmatpush.bf16.msra.mxu1 %v2607_v0  ;;  %2654 = vmatpush.bf16.msra.mxu3 %v2607_v0 }
 0x326   : > { %1911 = vmatpush.bf16.msra.mxu0 %v2598_v2  ;;  %2647 = vmatpush.bf16.msra.mxu2 %v2598_v2 }
 0x328   : > { %2020 = vmatpush.bf16.msra.mxu1 %v2606_v3  ;;  %2655 = vmatpush.bf16.msra.mxu3 %v2606_v3 }
 0x329   : > { %1912 = vmatmul.bf16.vlgmr.msra.gmra.mxu0 %v1832_v51  ;;  %1922 = vmatmul.bf16.vlgmr.msra.gmra.mxu2 %v1834_v52 }
 0x339   : > { %1917 = vmatmul.bf16.gmra.mxu0 %v1833_v61  ;;  %1927 = vmatmul.bf16.gmra.mxu2 %v1835_v62 }
 0x3a6   : > { %v1913_v1 = vpop.f32.mrf.mxu0 }
 0x3a7   : > { %v1914_v28 = vadd.f32 %v2864_v27, %v1913_v1 }
 0x3a9   : > { %v1933_v34 = vmax.f32 %v1914_v28, 0.0 }
 0x3ac   : > { %v1923_v32 = vpop.f32.mrf.mxu2 }
 0x3ad   : > { %v1924_v37 = vadd.f32 %v2864_v27, %v1923_v32 }
 0x3ae   : > { %v1915_v23 = vpop.f32.mrf.mxu0 }
 0x3af   : > { %v1916_v26 = vadd.f32 %v2864_v27, %v1915_v23  ;;  %v1937_v8 = vmax.f32 %v1924_v37, 0.0 }
 0x3b1   : > { %v1934_v36 = vmax.f32 %v1916_v26, 0.0 }
 0x3b3   : > { %v1941_v24 = vpack.c.bf16 %v1934_v36, %v1933_v34 }
 0x3b4   : > { %v1925_v4 = vpop.f32.mrf.mxu2 }
 0x3b5   : > { %v1926_v5 = vadd.f32 %v2864_v27, %v1925_v4  ;;  %2021 = vmatmul.bf16.vlgmr.msra.gmra.mxu1 %v1941_v24 }
 0x3b6   : > { %v1918_v7 = vpop.f32.mrf.mxu0 }
 0x3b7   : > { %v1938_v25 = vmax.f32 %v1926_v5, 0.0  ;;  %v1919_v9 = vadd.f32 %v2864_v27, %v1918_v7 }
 0x3b9   : > { %v1943_v44 = vpack.c.bf16 %v1938_v25, %v1937_v8  ;;  %v1935_v29 = vmax.f32 %v1919_v9, 0.0 }
 0x3bb   : > { %2031 = vmatmul.bf16.vlgmr.msra.gmra.mxu3 %v1943_v44 }
 0x3bc   : > { %v1928_v10 = vpop.f32.mrf.mxu2 }
 0x3bd   : > { %v1929_v14 = vadd.f32 %v2864_v27, %v1928_v10 }
 0x3be   : > { %v1920_v11 = vpop.f32.mrf.mxu0 }
 0x3bf   : > { %v1921_v12 = vadd.f32 %v2864_v27, %v1920_v11  ;;  %v1939_v15 = vmax.f32 %v1929_v14, 0.0 }
 0x3c1   : > { %v1936_v13 = vmax.f32 %v1921_v12, 0.0 }
 0x3c3   : > { %v1942_v16 = vpack.c.bf16 %v1936_v13, %v1935_v29 }
 0x3c4   : > { %v1930_v30 = vpop.f32.mrf.mxu2 }
 0x3c5   : > { %v1931_v18 = vadd.f32 %v2864_v27, %v1930_v30  ;;  %2026 = vmatmul.bf16.gmra.mxu1 %v1942_v16 }
 0x3c7   : > { %v1940_v19 = vmax.f32 %v1931_v18, 0.0 }
 0x3c9   : > { %v1944_v31 = vpack.c.bf16 %v1940_v19, %v1939_v15 }
 0x3cb   : > { %2036 = vmatmul.bf16.gmra.mxu3 %v1944_v31 }
 0x432   : > { %v2022_v33 = vpop.f32.mrf.mxu1 }
 0x433   : > { %v2023_v22 = vadd.f32 %v2865_v21, %v2022_v33 }
 0x435   : > { %2042 = vst [vmem:[%s3565_s14] sm:$0xff] %v2023_v22 }
 0x43a   : > { %v2024_v20 = vpop.f32.mrf.mxu1 }
 0x43b   : > { %v2025_v38 = vadd.f32 %v2865_v21, %v2024_v20 }
 0x43d   : > { %2043 = vst [vmem:[%s3565_s14 + $0x8] sm:$0xff] %v2025_v38 }
 0x43e   : > { %v2032_v35 = vpop.f32.mrf.mxu3 }
 0x43f   : > { %v2033_v39 = vadd.f32 %v2865_v21, %v2032_v35 }
 0x441   : > { %2046 = vst [vmem:[%s3565_s14 + $0x20] sm:$0xff] %v2033_v39 }
 0x442   : > { %v2027_v40 = vpop.f32.mrf.mxu1 }
 0x443   : > { %v2028_v41 = vadd.f32 %v2865_v21, %v2027_v40 }
 0x445   : > { %2044 = vst [vmem:[%s3565_s14 + $0x10] sm:$0xff] %v2028_v41 }
 0x446   : > { %v2034_v42 = vpop.f32.mrf.mxu3 }
 0x447   : > { %v2035_v6 = vadd.f32 %v2865_v21, %v2034_v42 }
 0x449   : > { %2047 = vst [vmem:[%s3565_s14 + $0x28] sm:$0xff] %v2035_v6 }
 0x44a   : > { %v2029_v43 = vpop.f32.mrf.mxu1 }
 0x44b   : > { %v2030_v45 = vadd.f32 %v2865_v21, %v2029_v43 }
 0x44d   : > { %2045 = vst [vmem:[%s3565_s14 + $0x18] sm:$0xff] %v2030_v45 }
 0x44e   : > { %v2037_v46 = vpop.f32.mrf.mxu3 }
 0x44f   : > { %v2038_v47 = vadd.f32 %v2865_v21, %v2037_v46 }
 0x451   : > { %2048 = vst [vmem:[%s3565_s14 + $0x30] sm:$0xff] %v2038_v47 }
 0x456   : > { %v2039_v48 = vpop.f32.mrf.mxu3 }
 0x457   : > { %v2040_v49 = vadd.f32 %v2865_v21, %v2039_v48 }
 0x459   : > { %2049 = vst [vmem:[%s3565_s14 + $0x38] sm:$0xff] %v2040_v49 }
 0x45a PF: > { %s4007_s22 = sld [smem:[#allocation26_spill]]  ;;  %s2063_s3 = sshll.u32 %s3565_s14, 4  ;;  %s2064_s3 = int_to_ptr.vmem [resolvable:$true] %s2063_s3 }
 0x45b   : > { %s4008_s26 = sld [smem:[#allocation42_spill]]  ;;  %s2051_s29 = scalar_lea.sflag [#allocation7], %s487_s20 }
 0x460   : > { %s2614_s12 = sshll.u32 %s4007_s22, 6 }
 0x461   : > { %s4009_s11 = smov %s4008_s26  ;;  %s2062_s24 = scalar_lea.hbm %s4008_s26, %s2614_s12 }
 0x462   : > { %s2065_s6 = sshll.u32 %s2062_s24, 4  ;;  %s3096_s0 = scalar_lea.hbm %s4009_s11, 256  ;;  %s2066_s6 = int_to_ptr.hbm [resolvable:$true] %s2065_s6 }
 0x463   : > { %s3090_s13 = sshra.s32 %s2066_s6, 4  ;;  %s3091_s13 = int_to_ptr.hbm [resolvable:$true] %s3090_s13 }
 0x464   : > { %s3092_s19 = scalar_lea.hbm %s3091_s13, 64  ;;  %p3097_p11 = scmp.lt.s32.totalorder %s3091_s13, %s4009_s11 }
 0x465   : > { %p3093_p6 = scmp.ne.s32.totalorder %s3091_s13, %s3092_s19  ;;  %p3098_p3 = scmp.lt.s32.totalorder %s3096_s0, %s3092_s19 }
 0x467   : > { %p3094_p7 = pnand %p3093_p6, %p3454_p9  ;;  %p3099_p12 = por %p3098_p3, %p3097_p11 }
 0x469   : > { %p3095_p8 = pneg %p3094_p7 }
 0x46b   : > { %p3100_p1 = pnand %p3099_p12, %p3095_p8 }
 0x46d   : > { %3103 = shalt.err (!%p3100_p1)
}
 0x46e   : > { %s3226_s20 = smov 128   ;;  %s3227_s14 = smov 8  }
 0x46f   : > { %2676 = dma.vmem_to_hbm [thread:$0]  (%p3454_p9), %s2064_s3, 1024, %s2066_s6, %s2051_s29, %s3226_s20, %s3226_s20, %s3227_s14  }
 0x470 PF: > { %s4010_s4 = sld [smem:[#allocation24_spill]]  ;;  %p2712_p13 = scmp.ge.s32.totalorder %s3214_s27, 2 }
 0x472   : > { %p2702_p0 = pnand %p2712_p13, %p3378_p10 }
 0x474   : > { %p2703_p2 = pneg %p2702_p0 }
 0x476   : > { %s2080_s2 = sand.u32 1, %s4010_s4  }
 0x477   : > { %s2081_s17 = scalar_lea.sflag [#allocation7], %s2080_s2 }
 0x478   : > { %3169 = dma.done.wait (%p2703_p2), %s2081_s17, 1024  }
 0x479   : > { %3171 = vsyncadd (%p2703_p2), %s2081_s17, 4294966272  ;;  %s29_s27 = sadd.s32 1, %s3214_s27   ;;  %s4012_s7 = sld [smem:[#allocation23_spill]] }
 0x47a   : > { %p26_p4 = scmp.ge.s32.totalorder %s29_s27, 18   ;;  %s4013_s19 = sld [smem:[#allocation32_spill]] }
 0x47b   : > { %s4014_s30 = sld [smem:[#allocation25_spill]]  ;;  %s4019_s17 = smov %s3178_s18 }
 0x47c   : > { %s4015_s22 = sld [smem:[#allocation31_spill]]  ;;  %s4021_s20 = smov %s3190_s21 }
 0x47d   : > { %s4016_s24 = sld [smem:[#allocation27_spill]]  ;;  %s4023_s23 = smov %s3206_s25 }
 0x47e   : > { %s4017_s12 = sld [smem:[#allocation28_spill]] }
 0x47f   : > { %s4018_s26 = sld [smem:[#allocation29_spill]]  ;;  %s4020_s18 = smov %s4012_s7 }
 0x480   :  { %28 = sbr.rel (!%p26_p4) target bundleno = 22 (0x16), region = 182 }
 0x481   : > { %s4022_s21 = smov %s4014_s30 }
 0x484   : > { %s4024_s25 = smov %s4017_s12 }
 0x485   :  { %2087 = vsyncpa [#allocation6], 1 }
 0x486   :  { %2089 = vsyncpa [#allocation6 + $0x1], 1 }
 0x487   :  { %2090 = vsyncpa [#allocation9], 1 }
 0x488   :  { %2091 = vsyncpa [#allocation15], 1 }
 0x489   :  { %2092 = vsyncpa [#allocation7], 1 }
 0x48a   :  { %2094 = vsyncpa [#allocation7 + $0x1], 1 }

</bundles_post_ra>
